<compile_context>
chip_gen: v7x
topology: tpu7x:2x2x1
jax: 0.10.0
libtpu: 0.0.40
codegen_flags: <defaults>
</compile_context>

<pallas_src>
import jax
import jax.numpy as jnp
from jax import lax
from jax.experimental import pallas as pl
from jax.experimental.pallas import tpu as pltpu

_BN_EPS = 1e-5
_NEG = float("-inf")
_VMEM_LIMIT = 32 * 1024 * 1024  # explicit, fits default scoped VMEM on v5e..v7x


# ----------------------------------------------------------------------------- tiling helpers
def _lane_tile(s, max_lanes=512):
    """Largest multiple-of-128 divisor of s that is <= max_lanes (else full s)."""
    if s <= max_lanes or s % 128 != 0:
        return s
    for t in range(max_lanes - max_lanes % 128, 127, -128):
        if s % t == 0:
            return t
    return s


def _row_tile(c, max_rows):
    """Largest multiple-of-8 divisor of c that is <= max_rows (else full c)."""
    if c <= max_rows:
        return c
    for t in range(max_rows - max_rows % 8, 7, -8):
        if c % t == 0:
            return t
    return c


# ----------------------------------------------------------------------------- in-kernel helpers
def _shift_flat(x, shift, fill):
    """v[..., p] = x[..., p + shift] where in range, `fill` elsewhere (static shift)."""
    if shift == 0:
        return x
    s = x.shape[-1]
    pad = jnp.full(x.shape[:-1] + (abs(shift),), fill, x.dtype)
    if shift > 0:
        return jnp.concatenate([x[..., shift:], pad], axis=-1)
    return jnp.concatenate([pad, x[..., : s + shift]], axis=-1)


def _tap(x, dy, dx, W, w_idx, fill):
    """x[c, h+dy, w+dx] on a (C, H*W)-flattened plane; out-of-range -> fill."""
    v = _shift_flat(x, dy * W + dx, fill)
    if dx > 0:
        v = jnp.where(w_idx < W - dx, v, fill)
    elif dx < 0:
        v = jnp.where(w_idx >= -dx, v, fill)
    return v


def _pool5_same(v, W, w_idx):
    """5x5 stride-1 'same' max pool (separable row/col passes) on a flattened plane."""
    row = v
    for d in (1, 2):
        row = jnp.maximum(row, _tap(v, 0, d, W, w_idx, _NEG))
        row = jnp.maximum(row, _tap(v, 0, -d, W, w_idx, _NEG))
    out = row
    for d in (1, 2):
        out = jnp.maximum(out, _tap(row, d, 0, W, w_idx, _NEG))
        out = jnp.maximum(out, _tap(row, -d, 0, W, w_idx, _NEG))
    return out


# ----------------------------------------------------------------------------- kernel 1: 1x1 conv + folded BN
def _pw_conv_kernel(x_ref, w_ref, b_ref, o_ref):
    # x_ref: (1, Cin, TS)   w_ref: (Cout, Cin)   b_ref: (Cout, 1)   o_ref: (1, Cout, TS)
    acc = jnp.dot(w_ref[...], x_ref[0].astype(jnp.float32),
                  preferred_element_type=jnp.float32)
    o_ref[0] = (acc + b_ref[...]).astype(o_ref.dtype)


def pointwise_conv_bn(x_ncs, w_eff, b_eff):
    n, cin, s = x_ncs.shape
    cout = w_eff.shape[0]
    ts = _lane_tile(s)
    return pl.pallas_call(
        _pw_conv_kernel,
        out_shape=jax.ShapeDtypeStruct((n, cout, s), x_ncs.dtype),
        grid=(n, s // ts),
        in_specs=[
            pl.BlockSpec((1, cin, ts), lambda i, j: (i, 0, j)),
            pl.BlockSpec((cout, cin), lambda i, j: (0, 0)),
            pl.BlockSpec((cout, 1), lambda i, j: (0, 0)),
        ],
        out_specs=pl.BlockSpec((1, cout, ts), lambda i, j: (i, 0, j)),
        compiler_params=pltpu.CompilerParams(
            dimension_semantics=("parallel", "parallel"),
            vmem_limit_bytes=_VMEM_LIMIT,
        ),
    )(x_ncs, w_eff, b_eff)


# ----------------------------------------------------------------------------- kernel 2: FReLU (dw 3x3 + BN + max)
def _make_frelu_kernel(H, W):
    def kernel(x_ref, w_ref, b_ref, o_ref):
        # x_ref: (1, TC, S)   w_ref: (9, TC, 1)   b_ref: (TC, 1)   o_ref: (1, TC, S)
        x = x_ref[0]
        xf = x.astype(jnp.float32)
        w_idx = lax.broadcasted_iota(jnp.int32, x.shape, 1) % W
        acc = jnp.zeros(x.shape, jnp.float32)
        for dy in (-1, 0, 1):
            for dx in (-1, 0, 1):
                t = (dy + 1) * 3 + (dx + 1)
                acc = acc + _tap(xf, dy, dx, W, w_idx, 0.0) * w_ref[t]
        funnel = acc + b_ref[...]
        o_ref[0] = jnp.maximum(x, funnel.astype(x.dtype))

    return kernel


def frelu(x_ncs, w9, b, H, W):
    n, c, s = x_ncs.shape
    tc = _row_tile(c, 256)
    return pl.pallas_call(
        _make_frelu_kernel(H, W),
        out_shape=jax.ShapeDtypeStruct((n, c, s), x_ncs.dtype),
        grid=(n, c // tc),
        in_specs=[
            pl.BlockSpec((1, tc, s), lambda i, j: (i, j, 0)),
            pl.BlockSpec((9, tc, 1), lambda i, j: (0, j, 0)),
            pl.BlockSpec((tc, 1), lambda i, j: (j, 0)),
        ],
        out_specs=pl.BlockSpec((1, tc, s), lambda i, j: (i, j, 0)),
        compiler_params=pltpu.CompilerParams(
            dimension_semantics=("parallel", "parallel"),
            vmem_limit_bytes=_VMEM_LIMIT,
        ),
    )(x_ncs, w9, b)


# ----------------------------------------------------------------------------- kernel 3: max-pool pyramid (5, 9, 13)
def _make_spp_pool_kernel(H, W):
    def kernel(y_ref, o_ref):
        # y_ref: (TP, S)   o_ref: (3, TP, S)  -> (p5, p9, p13)
        y = y_ref[...]
        w_idx = lax.broadcasted_iota(jnp.int32, y.shape, 1) % W
        p5 = _pool5_same(y, W, w_idx)
        p9 = _pool5_same(p5, W, w_idx)      # 5x5 o 5x5 == 9x9 'same' max pool
        p13 = _pool5_same(p9, W, w_idx)     # ... o 5x5 == 13x13
        o_ref[0] = p5
        o_ref[1] = p9
        o_ref[2] = p13

    return kernel


def spp_pools(y_ps, H, W):
    p, s = y_ps.shape
    tp = _row_tile(p, 256)   # capped channel-plane tile; large inputs tile over N*C
    nbytes = p * s * y_ps.dtype.itemsize
    return pl.pallas_call(
        _make_spp_pool_kernel(H, W),
        out_shape=jax.ShapeDtypeStruct((3, p, s), y_ps.dtype),
        grid=(p // tp,),
        in_specs=[pl.BlockSpec((tp, s), lambda i: (i, 0))],
        out_specs=pl.BlockSpec((3, tp, s), lambda i: (0, i, 0)),
        compiler_params=pltpu.CompilerParams(
            dimension_semantics=("parallel",),
            vmem_limit_bytes=_VMEM_LIMIT,
        ),
        cost_estimate=pl.CostEstimate(
            flops=int(48 * p * s),            # 3 chained 5x5 passes, 8 taps each
            transcendentals=0,
            bytes_accessed=int(4 * nbytes),   # read y + write p5/p9/p13
        ),
    )(y_ps)


# ----------------------------------------------------------------------------- kernel 4: cv2 head (concat + 1x1 + BN)
def _spp_head_kernel(y_ref, p_ref, w_ref, b_ref, o_ref):
    # y_ref: (1, c_, TS)  p_ref: (3, 1, c_, TS)  w_ref: (c2, 4*c_)  b_ref: (c2, 1)
    cat = jnp.concatenate(
        [y_ref[0], p_ref[0, 0], p_ref[1, 0], p_ref[2, 0]], axis=0
    ).astype(jnp.float32)
    acc = jnp.dot(w_ref[...], cat, preferred_element_type=jnp.float32)
    o_ref[0] = (acc + b_ref[...]).astype(o_ref.dtype)


def spp_head(y_ncs, pools_3ncs, w2_eff, b2_eff):
    n, c_, s = y_ncs.shape
    c2 = w2_eff.shape[0]
    ts = _lane_tile(s)
    return pl.pallas_call(
        _spp_head_kernel,
        out_shape=jax.ShapeDtypeStruct((n, c2, s), y_ncs.dtype),
        grid=(n, s // ts),
        in_specs=[
            pl.BlockSpec((1, c_, ts), lambda i, j: (i, 0, j)),
            pl.BlockSpec((3, 1, c_, ts), lambda i, j: (0, i, 0, j)),
            pl.BlockSpec((c2, 4 * c_), lambda i, j: (0, 0)),
            pl.BlockSpec((c2, 1), lambda i, j: (0, 0)),
        ],
        out_specs=pl.BlockSpec((1, c2, ts), lambda i, j: (i, 0, j)),
        compiler_params=pltpu.CompilerParams(
            dimension_semantics=("parallel", "parallel"),
            vmem_limit_bytes=_VMEM_LIMIT,
        ),
    )(y_ncs, pools_3ncs, w2_eff, b2_eff)


# ----------------------------------------------------------------------------- SPP forward (glue: free reshapes only)
def _bn_fold(gamma, beta, mean, var):
    scale = gamma / jnp.sqrt(var + _BN_EPS)
    return scale, beta - mean * scale


def spp_forward(x, params):
    n, c1, H, W = x.shape
    s = H * W
    c_ = params["w1"].shape[0]
    c2 = params["w2"].shape[0]

    # Fold inference-mode BatchNorms into the conv weights / biases.
    s1, t1 = _bn_fold(*params["bn1"])
    w1_eff = params["w1"] * s1[:, None]
    b1_eff = t1[:, None]

    fs1, ft1 = _bn_fold(*params["fbn1"])
    fw1 = (params["fw1"] * fs1[:, None, None]).reshape(c_, 9).T[:, :, None]
    fb1 = ft1[:, None]

    s2, t2 = _bn_fold(*params["bn2"])
    w2_eff = params["w2"] * s2[:, None]
    b2_eff = t2[:, None]

    fs2, ft2 = _bn_fold(*params["fbn2"])
    fw2 = (params["fw2"] * fs2[:, None, None]).reshape(c2, 9).T[:, :, None]
    fb2 = ft2[:, None]

    x_ncs = x.reshape(n, c1, s)                              # free reshape
    t = pointwise_conv_bn(x_ncs, w1_eff, b1_eff)             # cv1 conv + BN
    y = frelu(t, fw1, fb1, H, W)                             # cv1 activation
    pools = spp_pools(y.reshape(n * c_, s), H, W)            # p5 / p9 / p13
    z = spp_head(y, pools.reshape(3, n, c_, s), w2_eff, b2_eff)  # cv2 conv + BN
    out = frelu(z, fw2, fb2, H, W)                           # cv2 activation
    return out.reshape(n, c2, H, W)


# ----------------------------------------------------------------------------- pure-JAX reference
def _reference_spp(x, params):
    def bn(y, p):
        gamma, beta, mean, var = p
        sc = gamma / jnp.sqrt(var + _BN_EPS)
        return y * sc[None, :, None, None] + (beta - mean * sc)[None, :, None, None]

    def conv1x1(y, w):
        return jnp.einsum("oi,nihw->nohw", w, y, precision=lax.Precision.HIGHEST)

    def frelu_ref(y, fw, fbn):
        c = y.shape[1]
        t = lax.conv_general_dilated(
            y, fw[:, None, :, :], window_strides=(1, 1),
            padding=((1, 1), (1, 1)),
            dimension_numbers=("NCHW", "OIHW", "NCHW"),
            feature_group_count=c, precision=lax.Precision.HIGHEST)
        return jnp.maximum(y, bn(t, fbn))

    def maxpool_same(y, k):
        p = k // 2
        return lax.reduce_window(
            y, -jnp.inf, lax.max, (1, 1, k, k), (1, 1, 1, 1),
            ((0, 0), (0, 0), (p, p), (p, p)))

    y = frelu_ref(bn(conv1x1(x, params["w1"]), params["bn1"]),
                  params["fw1"], params["fbn1"])
    cat = jnp.concatenate([y] + [maxpool_same(y, k) for k in (5, 9, 13)], axis=1)
    z = bn(conv1x1(cat, params["w2"]), params["bn2"])
    return frelu_ref(z, params["fw2"], params["fbn2"])


# ----------------------------------------------------------------------------- demo / self-check
if __name__ == "__main__":
    key = jax.random.PRNGKey(0)
    ks = jax.random.split(key, 9)

    N, C1, H, W = 2, 16, 16, 16
    C2 = 16
    C_ = C1 // 2

    x = jax.random.normal(ks[0], (N, C1, H, W), dtype=jnp.float32)

    def bn_params(k, c):
        k1, k2, k3, k4 = jax.random.split(k, 4)
        return (1.0 + 0.1 * jax.random.normal(k1, (c,), jnp.float32),   # gamma
                0.1 * jax.random.normal(k2, (c,), jnp.float32),          # beta
                0.1 * jax.random.normal(k3, (c,), jnp.float32),          # running mean
                1.0 + 0.1 * jax.random.uniform(k4, (c,), jnp.float32))   # running var

    params = {
        "w1": 0.3 * jax.random.normal(ks[1], (C_, C1), jnp.float32),
        "bn1": bn_params(ks[2], C_),
        "fw1": 0.3 * jax.random.normal(ks[3], (C_, 3, 3), jnp.float32),
        "fbn1": bn_params(ks[4], C_),
        "w2": 0.3 * jax.random.normal(ks[5], (C2, 4 * C_), jnp.float32),
        "bn2": bn_params(ks[6], C2),
        "fw2": 0.3 * jax.random.normal(ks[7], (C2, 3, 3), jnp.float32),
        "fbn2": bn_params(ks[8], C2),
    }

    out = jax.block_until_ready(jax.jit(spp_forward)(x, params))
    ref = jax.block_until_ready(_reference_spp(x, params))

    assert out.shape == (N, C2, H, W), out.shape
    assert bool(jnp.all(jnp.isfinite(out))), "non-finite output"
    assert bool(jnp.allclose(out, ref, atol=5e-3, rtol=5e-3)), float(
        jnp.max(jnp.abs(out - ref)))

    print("KERNEL_OK")
</pallas_src>

<mosaic_0001>
module attributes {stable_mosaic.version = 11 : i64} {
  func.func @_pw_conv_kernel(%arg0: i32, %arg1: i32, %arg2: memref<1x16x256xf32, #tpu.memory_space<vmem>>, %arg3: memref<8x16xf32, #tpu.memory_space<vmem>>, %arg4: memref<8x1xf32, #tpu.memory_space<vmem>>, %arg5: memref<1x8x256xf32, #tpu.memory_space<vmem>>) attributes {dimension_semantics = [#tpu.dimension_semantics<parallel>, #tpu.dimension_semantics<parallel>], iteration_bounds = array<i64: 2, 1>, scalar_prefetch = 0 : i64, scratch_operands = 0 : i64, tpu.core_type = #tpu.core_type<tc>, window_params = [{transform_indices = @transform_0, window_bounds = array<i64: 1, 16, 256>}, {pipeline_mode = #tpu.pipeline_mode<synchronous>, transform_indices = @transform_1, window_bounds = array<i64: 8, 16>}, {pipeline_mode = #tpu.pipeline_mode<synchronous>, transform_indices = @transform_2, window_bounds = array<i64: 8, 1>}, {transform_indices = @transform_3, window_bounds = array<i64: 1, 8, 256>}]} {
    %c0 = arith.constant 0 : index
    %c0_0 = arith.constant 0 : index
    %0 = vector.load %arg3[%c0, %c0_0] : memref<8x16xf32, #tpu.memory_space<vmem>>, vector<8x16xf32>
    %c0_1 = arith.constant 0 : index
    %c0_2 = arith.constant 0 : index
    %c0_3 = arith.constant 0 : index
    %1 = vector.load %arg2[%c0_1, %c0_2, %c0_3] : memref<1x16x256xf32, #tpu.memory_space<vmem>>, vector<1x16x256xf32>
    %2 = vector.shape_cast %1 : vector<1x16x256xf32> to vector<16x256xf32>
    %cst = arith.constant dense<0.000000e+00> : vector<8x256xf32>
    %3 = tpu.matmul %0, %2, %cst {dimension_numbers = #tpu.dot_dimension_numbers<[1], [0], [0], [1], [0, 0, 1, 1], [], []>} : vector<8x16xf32>, vector<16x256xf32>, vector<8x256xf32> -> vector<8x256xf32>
    %c0_4 = arith.constant 0 : index
    %c0_5 = arith.constant 0 : index
    %4 = vector.load %arg4[%c0_4, %c0_5] : memref<8x1xf32, #tpu.memory_space<vmem>>, vector<8x1xf32>
    %5 = vector.broadcast %4 : vector<8x1xf32> to vector<8x256xf32>
    %6 = arith.addf %3, %5 : vector<8x256xf32>
    %c0_6 = arith.constant 0 : index
    %c0_7 = arith.constant 0 : index
    %c0_8 = arith.constant 0 : index
    %7 = vector.load %arg5[%c0_6, %c0_7, %c0_8] : memref<1x8x256xf32, #tpu.memory_space<vmem>>, vector<1x8x256xf32>
    %8 = vector.shape_cast %7 : vector<1x8x256xf32> to vector<8x256xf32>
    %9 = vector.shape_cast %6 : vector<8x256xf32> to vector<1x8x256xf32>
    tpu.vector_store %arg5[%c0_6, %c0_7, %c0_8], %9 {strides = array<i32>} : memref<1x8x256xf32, #tpu.memory_space<vmem>>, vector<1x8x256xf32>,
    return
  }
  func.func @transform_0(%arg0: i32, %arg1: i32) -> (i32, i32, i32) {
    %c0_i32 = arith.constant 0 : i32
    %c0_i32_0 = arith.constant 0 : i32
    return %arg0, %c0_i32, %arg1 : i32, i32, i32
  }
  func.func @transform_1(%arg0: i32, %arg1: i32) -> (i32, i32) {
    %c0_i32 = arith.constant 0 : i32
    %c0_i32_0 = arith.constant 0 : i32
    %c0_i32_1 = arith.constant 0 : i32
    return %c0_i32, %c0_i32_0 : i32, i32
  }
  func.func @transform_2(%arg0: i32, %arg1: i32) -> (i32, i32) {
    %c0_i32 = arith.constant 0 : i32
    %c0_i32_0 = arith.constant 0 : i32
    %c0_i32_1 = arith.constant 0 : i32
    return %c0_i32, %c0_i32_0 : i32, i32
  }
  func.func @transform_3(%arg0: i32, %arg1: i32) -> (i32, i32, i32) {
    %c0_i32 = arith.constant 0 : i32
    %c0_i32_0 = arith.constant 0 : i32
    return %arg0, %c0_i32, %arg1 : i32, i32, i32
  }
}

module attributes {stable_mosaic.version = 11 : i64} {
  func.func @kernel(%arg0: i32, %arg1: memref<16x256xf32, #tpu.memory_space<vmem>>, %arg2: memref<3x16x256xf32, #tpu.memory_space<vmem>>) attributes {dimension_semantics = [#tpu.dimension_semantics<parallel>], iteration_bounds = array<i64: 1>, scalar_prefetch = 0 : i64, scratch_operands = 0 : i64, tpu.core_type = #tpu.core_type<tc>, window_params = [{transform_indices = @transform_0, window_bounds = array<i64: 16, 256>}, {transform_indices = @transform_1, window_bounds = array<i64: 3, 16, 256>}]} {
    %c0 = arith.constant 0 : index
    %c0_0 = arith.constant 0 : index
    %0 = vector.load %arg1[%c0, %c0_0] : memref<16x256xf32, #tpu.memory_space<vmem>>, vector<16x256xf32>
    %1 = tpu.iota {dimensions = array<i32: 1>} : vector<16x256xi32>
    %c16_i32 = arith.constant 16 : i32
    %c0_i32 = arith.constant 0 : i32
    %2 = arith.cmpi eq, %c16_i32, %c0_i32 : i32
    %c1_i32 = arith.constant 1 : i32
    %3 = arith.select %2, %c1_i32, %c16_i32 : i32
    %4 = vector.broadcast %3 : i32 to vector<16x256xi32>
    %5 = arith.remsi %1, %4 : vector<16x256xi32>
    %c0_i32_1 = arith.constant 0 : i32
    %6 = vector.broadcast %c0_i32_1 : i32 to vector<16x256xi32>
    %7 = arith.cmpi ne, %5, %6 : vector<16x256xi32>
    %c0_i32_2 = arith.constant 0 : i32
    %8 = vector.broadcast %c0_i32_2 : i32 to vector<16x256xi32>
    %9 = arith.cmpi slt, %5, %8 : vector<16x256xi32>
    %c0_i32_3 = arith.constant 0 : i32
    %10 = arith.cmpi slt, %3, %c0_i32_3 : i32
    %11 = vector.broadcast %10 : i1 to vector<16x256xi1>
    %12 = vector.broadcast %11 : vector<16x256xi1> to vector<16x256xi1>
    %13 = arith.xori %9, %12 : vector<16x256xi1>
    %14 = arith.andi %13, %7 : vector<16x256xi1>
    %15 = vector.broadcast %3 : i32 to vector<16x256xi32>
    %16 = arith.addi %5, %15 : vector<16x256xi32>
    %17 = arith.select %14, %16, %5 : vector<16x256xi1>, vector<16x256xi32>
    %cst = arith.constant 0xFF800000 : f32
    %18 = vector.broadcast %cst : f32 to vector<16x1xf32>
    %19 = vector.extract_strided_slice %0 {offsets = [0, 1], sizes = [16, 255], strides = [1, 1]} : vector<16x256xf32> to vector<16x255xf32>
    %20 = tpu.concatenate %19, %18 in 1 : vector<16x255xf32>, vector<16x1xf32> -> vector<16x256xf32>
    %c15_i32 = arith.constant 15 : i32
    %21 = vector.broadcast %c15_i32 : i32 to vector<16x256xi32>
    %22 = arith.cmpi slt, %17, %21 : vector<16x256xi32>
    %cst_4 = arith.constant 0xFF800000 : f32
    %23 = vector.broadcast %cst_4 : f32 to vector<16x256xf32>
    %24 = arith.select %22, %20, %23 : vector<16x256xi1>, vector<16x256xf32>
    %25 = arith.maximumf %0, %24 : vector<16x256xf32>
    %cst_5 = arith.constant 0xFF800000 : f32
    %26 = vector.broadcast %cst_5 : f32 to vector<16x1xf32>
    %27 = vector.extract_strided_slice %0 {offsets = [0, 0], sizes = [16, 255], strides = [1, 1]} : vector<16x256xf32> to vector<16x255xf32>
    %28 = tpu.concatenate %26, %27 in 1 : vector<16x1xf32>, vector<16x255xf32> -> vector<16x256xf32>
    %c1_i32_6 = arith.constant 1 : i32
    %29 = vector.broadcast %c1_i32_6 : i32 to vector<16x256xi32>
    %30 = arith.cmpi sge, %17, %29 : vector<16x256xi32>
    %cst_7 = arith.constant 0xFF800000 : f32
    %31 = vector.broadcast %cst_7 : f32 to vector<16x256xf32>
    %32 = arith.select %30, %28, %31 : vector<16x256xi1>, vector<16x256xf32>
    %33 = arith.maximumf %25, %32 : vector<16x256xf32>
    %cst_8 = arith.constant 0xFF800000 : f32
    %34 = vector.broadcast %cst_8 : f32 to vector<16x2xf32>
    %35 = vector.extract_strided_slice %0 {offsets = [0, 2], sizes = [16, 254], strides = [1, 1]} : vector<16x256xf32> to vector<16x254xf32>
    %36 = tpu.concatenate %35, %34 in 1 : vector<16x254xf32>, vector<16x2xf32> -> vector<16x256xf32>
    %c14_i32 = arith.constant 14 : i32
    %37 = vector.broadcast %c14_i32 : i32 to vector<16x256xi32>
    %38 = arith.cmpi slt, %17, %37 : vector<16x256xi32>
    %cst_9 = arith.constant 0xFF800000 : f32
    %39 = vector.broadcast %cst_9 : f32 to vector<16x256xf32>
    %40 = arith.select %38, %36, %39 : vector<16x256xi1>, vector<16x256xf32>
    %41 = arith.maximumf %33, %40 : vector<16x256xf32>
    %cst_10 = arith.constant 0xFF800000 : f32
    %42 = vector.broadcast %cst_10 : f32 to vector<16x2xf32>
    %43 = vector.extract_strided_slice %0 {offsets = [0, 0], sizes = [16, 254], strides = [1, 1]} : vector<16x256xf32> to vector<16x254xf32>
    %44 = tpu.concatenate %42, %43 in 1 : vector<16x2xf32>, vector<16x254xf32> -> vector<16x256xf32>
    %c2_i32 = arith.constant 2 : i32
    %45 = vector.broadcast %c2_i32 : i32 to vector<16x256xi32>
    %46 = arith.cmpi sge, %17, %45 : vector<16x256xi32>
    %cst_11 = arith.constant 0xFF800000 : f32
    %47 = vector.broadcast %cst_11 : f32 to vector<16x256xf32>
    %48 = arith.select %46, %44, %47 : vector<16x256xi1>, vector<16x256xf32>
    %49 = arith.maximumf %41, %48 : vector<16x256xf32>
    %cst_12 = arith.constant 0xFF800000 : f32
    %50 = vector.broadcast %cst_12 : f32 to vector<16x16xf32>
    %51 = vector.extract_strided_slice %49 {offsets = [0, 16], sizes = [16, 240], strides = [1, 1]} : vector<16x256xf32> to vector<16x240xf32>
    %52 = tpu.concatenate %51, %50 in 1 : vector<16x240xf32>, vector<16x16xf32> -> vector<16x256xf32>
    %53 = arith.maximumf %49, %52 : vector<16x256xf32>
    %cst_13 = arith.constant 0xFF800000 : f32
    %54 = vector.broadcast %cst_13 : f32 to vector<16x16xf32>
    %55 = vector.extract_strided_slice %49 {offsets = [0, 0], sizes = [16, 240], strides = [1, 1]} : vector<16x256xf32> to vector<16x240xf32>
    %56 = tpu.concatenate %54, %55 in 1 : vector<16x16xf32>, vector<16x240xf32> -> vector<16x256xf32>
    %57 = arith.maximumf %53, %56 : vector<16x256xf32>
    %cst_14 = arith.constant 0xFF800000 : f32
    %58 = vector.broadcast %cst_14 : f32 to vector<16x32xf32>
    %59 = vector.extract_strided_slice %49 {offsets = [0, 32], sizes = [16, 224], strides = [1, 1]} : vector<16x256xf32> to vector<16x224xf32>
    %60 = tpu.concatenate %59, %58 in 1 : vector<16x224xf32>, vector<16x32xf32> -> vector<16x256xf32>
    %61 = arith.maximumf %57, %60 : vector<16x256xf32>
    %cst_15 = arith.constant 0xFF800000 : f32
    %62 = vector.broadcast %cst_15 : f32 to vector<16x32xf32>
    %63 = vector.extract_strided_slice %49 {offsets = [0, 0], sizes = [16, 224], strides = [1, 1]} : vector<16x256xf32> to vector<16x224xf32>
    %64 = tpu.concatenate %62, %63 in 1 : vector<16x32xf32>, vector<16x224xf32> -> vector<16x256xf32>
    %65 = arith.maximumf %61, %64 : vector<16x256xf32>
    %cst_16 = arith.constant 0xFF800000 : f32
    %66 = vector.broadcast %cst_16 : f32 to vector<16x1xf32>
    %67 = vector.extract_strided_slice %65 {offsets = [0, 1], sizes = [16, 255], strides = [1, 1]} : vector<16x256xf32> to vector<16x255xf32>
    %68 = tpu.concatenate %67, %66 in 1 : vector<16x255xf32>, vector<16x1xf32> -> vector<16x256xf32>
    %c15_i32_17 = arith.constant 15 : i32
    %69 = vector.broadcast %c15_i32_17 : i32 to vector<16x256xi32>
    %70 = arith.cmpi slt, %17, %69 : vector<16x256xi32>
    %cst_18 = arith.constant 0xFF800000 : f32
    %71 = vector.broadcast %cst_18 : f32 to vector<16x256xf32>
    %72 = arith.select %70, %68, %71 : vector<16x256xi1>, vector<16x256xf32>
    %73 = arith.maximumf %65, %72 : vector<16x256xf32>
    %cst_19 = arith.constant 0xFF800000 : f32
    %74 = vector.broadcast %cst_19 : f32 to vector<16x1xf32>
    %75 = vector.extract_strided_slice %65 {offsets = [0, 0], sizes = [16, 255], strides = [1, 1]} : vector<16x256xf32> to vector<16x255xf32>
    %76 = tpu.concatenate %74, %75 in 1 : vector<16x1xf32>, vector<16x255xf32> -> vector<16x256xf32>
    %c1_i32_20 = arith.constant 1 : i32
    %77 = vector.broadcast %c1_i32_20 : i32 to vector<16x256xi32>
    %78 = arith.cmpi sge, %17, %77 : vector<16x256xi32>
    %cst_21 = arith.constant 0xFF800000 : f32
    %79 = vector.broadcast %cst_21 : f32 to vector<16x256xf32>
    %80 = arith.select %78, %76, %79 : vector<16x256xi1>, vector<16x256xf32>
    %81 = arith.maximumf %73, %80 : vector<16x256xf32>
    %cst_22 = arith.constant 0xFF800000 : f32
    %82 = vector.broadcast %cst_22 : f32 to vector<16x2xf32>
    %83 = vector.extract_strided_slice %65 {offsets = [0, 2], sizes = [16, 254], strides = [1, 1]} : vector<16x256xf32> to vector<16x254xf32>
    %84 = tpu.concatenate %83, %82 in 1 : vector<16x254xf32>, vector<16x2xf32> -> vector<16x256xf32>
    %c14_i32_23 = arith.constant 14 : i32
    %85 = vector.broadcast %c14_i32_23 : i32 to vector<16x256xi32>
    %86 = arith.cmpi slt, %17, %85 : vector<16x256xi32>
    %cst_24 = arith.constant 0xFF800000 : f32
    %87 = vector.broadcast %cst_24 : f32 to vector<16x256xf32>
    %88 = arith.select %86, %84, %87 : vector<16x256xi1>, vector<16x256xf32>
    %89 = arith.maximumf %81, %88 : vector<16x256xf32>
    %cst_25 = arith.constant 0xFF800000 : f32
    %90 = vector.broadcast %cst_25 : f32 to vector<16x2xf32>
    %91 = vector.extract_strided_slice %65 {offsets = [0, 0], sizes = [16, 254], strides = [1, 1]} : vector<16x256xf32> to vector<16x254xf32>
    %92 = tpu.concatenate %90, %91 in 1 : vector<16x2xf32>, vector<16x254xf32> -> vector<16x256xf32>
    %c2_i32_26 = arith.constant 2 : i32
    %93 = vector.broadcast %c2_i32_26 : i32 to vector<16x256xi32>
    %94 = arith.cmpi sge, %17, %93 : vector<16x256xi32>
    %cst_27 = arith.constant 0xFF800000 : f32
    %95 = vector.broadcast %cst_27 : f32 to vector<16x256xf32>
    %96 = arith.select %94, %92, %95 : vector<16x256xi1>, vector<16x256xf32>
    %97 = arith.maximumf %89, %96 : vector<16x256xf32>
    %cst_28 = arith.constant 0xFF800000 : f32
    %98 = vector.broadcast %cst_28 : f32 to vector<16x16xf32>
    %99 = vector.extract_strided_slice %97 {offsets = [0, 16], sizes = [16, 240], strides = [1, 1]} : vector<16x256xf32> to vector<16x240xf32>
    %100 = tpu.concatenate %99, %98 in 1 : vector<16x240xf32>, vector<16x16xf32> -> vector<16x256xf32>
    %101 = arith.maximumf %97, %100 : vector<16x256xf32>
    %cst_29 = arith.constant 0xFF800000 : f32
    %102 = vector.broadcast %cst_29 : f32 to vector<16x16xf32>
    %103 = vector.extract_strided_slice %97 {offsets = [0, 0], sizes = [16, 240], strides = [1, 1]} : vector<16x256xf32> to vector<16x240xf32>
    %104 = tpu.concatenate %102, %103 in 1 : vector<16x16xf32>, vector<16x240xf32> -> vector<16x256xf32>
    %105 = arith.maximumf %101, %104 : vector<16x256xf32>
    %cst_30 = arith.constant 0xFF800000 : f32
    %106 = vector.broadcast %cst_30 : f32 to vector<16x32xf32>
    %107 = vector.extract_strided_slice %97 {offsets = [0, 32], sizes = [16, 224], strides = [1, 1]} : vector<16x256xf32> to vector<16x224xf32>
    %108 = tpu.concatenate %107, %106 in 1 : vector<16x224xf32>, vector<16x32xf32> -> vector<16x256xf32>
    %109 = arith.maximumf %105, %108 : vector<16x256xf32>
    %cst_31 = arith.constant 0xFF800000 : f32
    %110 = vector.broadcast %cst_31 : f32 to vector<16x32xf32>
    %111 = vector.extract_strided_slice %97 {offsets = [0, 0], sizes = [16, 224], strides = [1, 1]} : vector<16x256xf32> to vector<16x224xf32>
    %112 = tpu.concatenate %110, %111 in 1 : vector<16x32xf32>, vector<16x224xf32> -> vector<16x256xf32>
    %113 = arith.maximumf %109, %112 : vector<16x256xf32>
    %cst_32 = arith.constant 0xFF800000 : f32
    %114 = vector.broadcast %cst_32 : f32 to vector<16x1xf32>
    %115 = vector.extract_strided_slice %113 {offsets = [0, 1], sizes = [16, 255], strides = [1, 1]} : vector<16x256xf32> to vector<16x255xf32>
    %116 = tpu.concatenate %115, %114 in 1 : vector<16x255xf32>, vector<16x1xf32> -> vector<16x256xf32>
    %c15_i32_33 = arith.constant 15 : i32
    %117 = vector.broadcast %c15_i32_33 : i32 to vector<16x256xi32>
    %118 = arith.cmpi slt, %17, %117 : vector<16x256xi32>
    %cst_34 = arith.constant 0xFF800000 : f32
    %119 = vector.broadcast %cst_34 : f32 to vector<16x256xf32>
    %120 = arith.select %118, %116, %119 : vector<16x256xi1>, vector<16x256xf32>
    %121 = arith.maximumf %113, %120 : vector<16x256xf32>
    %cst_35 = arith.constant 0xFF800000 : f32
    %122 = vector.broadcast %cst_35 : f32 to vector<16x1xf32>
    %123 = vector.extract_strided_slice %113 {offsets = [0, 0], sizes = [16, 255], strides = [1, 1]} : vector<16x256xf32> to vector<16x255xf32>
    %124 = tpu.concatenate %122, %123 in 1 : vector<16x1xf32>, vector<16x255xf32> -> vector<16x256xf32>
    %c1_i32_36 = arith.constant 1 : i32
    %125 = vector.broadcast %c1_i32_36 : i32 to vector<16x256xi32>
    %126 = arith.cmpi sge, %17, %125 : vector<16x256xi32>
    %cst_37 = arith.constant 0xFF800000 : f32
    %127 = vector.broadcast %cst_37 : f32 to vector<16x256xf32>
    %128 = arith.select %126, %124, %127 : vector<16x256xi1>, vector<16x256xf32>
    %129 = arith.maximumf %121, %128 : vector<16x256xf32>
    %cst_38 = arith.constant 0xFF800000 : f32
    %130 = vector.broadcast %cst_38 : f32 to vector<16x2xf32>
    %131 = vector.extract_strided_slice %113 {offsets = [0, 2], sizes = [16, 254], strides = [1, 1]} : vector<16x256xf32> to vector<16x254xf32>
    %132 = tpu.concatenate %131, %130 in 1 : vector<16x254xf32>, vector<16x2xf32> -> vector<16x256xf32>
    %c14_i32_39 = arith.constant 14 : i32
    %133 = vector.broadcast %c14_i32_39 : i32 to vector<16x256xi32>
    %134 = arith.cmpi slt, %17, %133 : vector<16x256xi32>
    %cst_40 = arith.constant 0xFF800000 : f32
    %135 = vector.broadcast %cst_40 : f32 to vector<16x256xf32>
    %136 = arith.select %134, %132, %135 : vector<16x256xi1>, vector<16x256xf32>
    %137 = arith.maximumf %129, %136 : vector<16x256xf32>
    %cst_41 = arith.constant 0xFF800000 : f32
    %138 = vector.broadcast %cst_41 : f32 to vector<16x2xf32>
    %139 = vector.extract_strided_slice %113 {offsets = [0, 0], sizes = [16, 254], strides = [1, 1]} : vector<16x256xf32> to vector<16x254xf32>
    %140 = tpu.concatenate %138, %139 in 1 : vector<16x2xf32>, vector<16x254xf32> -> vector<16x256xf32>
    %c2_i32_42 = arith.constant 2 : i32
    %141 = vector.broadcast %c2_i32_42 : i32 to vector<16x256xi32>
    %142 = arith.cmpi sge, %17, %141 : vector<16x256xi32>
    %cst_43 = arith.constant 0xFF800000 : f32
    %143 = vector.broadcast %cst_43 : f32 to vector<16x256xf32>
    %144 = arith.select %142, %140, %143 : vector<16x256xi1>, vector<16x256xf32>
    %145 = arith.maximumf %137, %144 : vector<16x256xf32>
    %cst_44 = arith.constant 0xFF800000 : f32
    %146 = vector.broadcast %cst_44 : f32 to vector<16x16xf32>
    %147 = vector.extract_strided_slice %145 {offsets = [0, 16], sizes = [16, 240], strides = [1, 1]} : vector<16x256xf32> to vector<16x240xf32>
    %148 = tpu.concatenate %147, %146 in 1 : vector<16x240xf32>, vector<16x16xf32> -> vector<16x256xf32>
    %149 = arith.maximumf %145, %148 : vector<16x256xf32>
    %cst_45 = arith.constant 0xFF800000 : f32
    %150 = vector.broadcast %cst_45 : f32 to vector<16x16xf32>
    %151 = vector.extract_strided_slice %145 {offsets = [0, 0], sizes = [16, 240], strides = [1, 1]} : vector<16x256xf32> to vector<16x240xf32>
    %152 = tpu.concatenate %150, %151 in 1 : vector<16x16xf32>, vector<16x240xf32> -> vector<16x256xf32>
    %153 = arith.maximumf %149, %152 : vector<16x256xf32>
    %cst_46 = arith.constant 0xFF800000 : f32
    %154 = vector.broadcast %cst_46 : f32 to vector<16x32xf32>
    %155 = vector.extract_strided_slice %145 {offsets = [0, 32], sizes = [16, 224], strides = [1, 1]} : vector<16x256xf32> to vector<16x224xf32>
    %156 = tpu.concatenate %155, %154 in 1 : vector<16x224xf32>, vector<16x32xf32> -> vector<16x256xf32>
    %157 = arith.maximumf %153, %156 : vector<16x256xf32>
    %cst_47 = arith.constant 0xFF800000 : f32
    %158 = vector.broadcast %cst_47 : f32 to vector<16x32xf32>
    %159 = vector.extract_strided_slice %145 {offsets = [0, 0], sizes = [16, 224], strides = [1, 1]} : vector<16x256xf32> to vector<16x224xf32>
    %160 = tpu.concatenate %158, %159 in 1 : vector<16x32xf32>, vector<16x224xf32> -> vector<16x256xf32>
    %161 = arith.maximumf %157, %160 : vector<16x256xf32>
    %c0_48 = arith.constant 0 : index
    %c0_49 = arith.constant 0 : index
    %c0_50 = arith.constant 0 : index
    %162 = vector.load %arg2[%c0_48, %c0_49, %c0_50] : memref<3x16x256xf32, #tpu.memory_space<vmem>>, vector<1x16x256xf32>
    %163 = vector.shape_cast %162 : vector<1x16x256xf32> to vector<16x256xf32>
    %164 = vector.shape_cast %65 : vector<16x256xf32> to vector<1x16x256xf32>
    tpu.vector_store %arg2[%c0_48, %c0_49, %c0_50], %164 {strides = array<i32>} : memref<3x16x256xf32, #tpu.memory_space<vmem>>, vector<1x16x256xf32>,
    %c1 = arith.constant 1 : index
    %c0_51 = arith.constant 0 : index
    %c0_52 = arith.constant 0 : index
    %165 = vector.load %arg2[%c1, %c0_51, %c0_52] : memref<3x16x256xf32, #tpu.memory_space<vmem>>, vector<1x16x256xf32>
    %166 = vector.shape_cast %165 : vector<1x16x256xf32> to vector<16x256xf32>
    %167 = vector.shape_cast %113 : vector<16x256xf32> to vector<1x16x256xf32>
    tpu.vector_store %arg2[%c1, %c0_51, %c0_52], %167 {strides = array<i32>} : memref<3x16x256xf32, #tpu.memory_space<vmem>>, vector<1x16x256xf32>,
    %c2 = arith.constant 2 : index
    %c0_53 = arith.constant 0 : index
    %c0_54 = arith.constant 0 : index
    %168 = vector.load %arg2[%c2, %c0_53, %c0_54] : memref<3x16x256xf32, #tpu.memory_space<vmem>>, vector<1x16x256xf32>
    %169 = vector.shape_cast %168 : vector<1x16x256xf32> to vector<16x256xf32>
    %170 = vector.shape_cast %161 : vector<16x256xf32> to vector<1x16x256xf32>
    tpu.vector_store %arg2[%c2, %c0_53, %c0_54], %170 {strides = array<i32>} : memref<3x16x256xf32, #tpu.memory_space<vmem>>, vector<1x16x256xf32>,
    return
  }
  func.func @transform_0(%arg0: i32) -> (i32, i32) {
    %c0_i32 = arith.constant 0 : i32
    %c0_i32_0 = arith.constant 0 : i32
    return %arg0, %c0_i32 : i32, i32
  }
  func.func @transform_1(%arg0: i32) -> (i32, i32, i32) {
    %c0_i32 = arith.constant 0 : i32
    %c0_i32_0 = arith.constant 0 : i32
    %c0_i32_1 = arith.constant 0 : i32
    return %c0_i32, %arg0, %c0_i32_0 : i32, i32, i32
  }
}

module attributes {stable_mosaic.version = 11 : i64} {
  func.func @kernel(%arg0: i32, %arg1: i32, %arg2: memref<1x8x256xf32, #tpu.memory_space<vmem>>, %arg3: memref<9x8x1xf32, #tpu.memory_space<vmem>>, %arg4: memref<8x1xf32, #tpu.memory_space<vmem>>, %arg5: memref<1x8x256xf32, #tpu.memory_space<vmem>>) attributes {dimension_semantics = [#tpu.dimension_semantics<parallel>, #tpu.dimension_semantics<parallel>], iteration_bounds = array<i64: 2, 1>, scalar_prefetch = 0 : i64, scratch_operands = 0 : i64, tpu.core_type = #tpu.core_type<tc>, window_params = [{transform_indices = @transform_0, window_bounds = array<i64: 1, 8, 256>}, {transform_indices = @transform_1, window_bounds = array<i64: 9, 8, 1>}, {transform_indices = @transform_2, window_bounds = array<i64: 8, 1>}, {transform_indices = @transform_3, window_bounds = array<i64: 1, 8, 256>}]} {
    %c0 = arith.constant 0 : index
    %c0_0 = arith.constant 0 : index
    %c0_1 = arith.constant 0 : index
    %0 = vector.load %arg2[%c0, %c0_0, %c0_1] : memref<1x8x256xf32, #tpu.memory_space<vmem>>, vector<1x8x256xf32>
    %1 = vector.shape_cast %0 : vector<1x8x256xf32> to vector<8x256xf32>
    %2 = tpu.iota {dimensions = array<i32: 1>} : vector<8x256xi32>
    %c16_i32 = arith.constant 16 : i32
    %c0_i32 = arith.constant 0 : i32
    %3 = arith.cmpi eq, %c16_i32, %c0_i32 : i32
    %c1_i32 = arith.constant 1 : i32
    %4 = arith.select %3, %c1_i32, %c16_i32 : i32
    %5 = vector.broadcast %4 : i32 to vector<8x256xi32>
    %6 = arith.remsi %2, %5 : vector<8x256xi32>
    %c0_i32_2 = arith.constant 0 : i32
    %7 = vector.broadcast %c0_i32_2 : i32 to vector<8x256xi32>
    %8 = arith.cmpi ne, %6, %7 : vector<8x256xi32>
    %c0_i32_3 = arith.constant 0 : i32
    %9 = vector.broadcast %c0_i32_3 : i32 to vector<8x256xi32>
    %10 = arith.cmpi slt, %6, %9 : vector<8x256xi32>
    %c0_i32_4 = arith.constant 0 : i32
    %11 = arith.cmpi slt, %4, %c0_i32_4 : i32
    %12 = vector.broadcast %11 : i1 to vector<8x256xi1>
    %13 = vector.broadcast %12 : vector<8x256xi1> to vector<8x256xi1>
    %14 = arith.xori %10, %13 : vector<8x256xi1>
    %15 = arith.andi %14, %8 : vector<8x256xi1>
    %16 = vector.broadcast %4 : i32 to vector<8x256xi32>
    %17 = arith.addi %6, %16 : vector<8x256xi32>
    %18 = arith.select %15, %17, %6 : vector<8x256xi1>, vector<8x256xi32>
    %cst = arith.constant 0.000000e+00 : f32
    %19 = vector.broadcast %cst : f32 to vector<8x256xf32>
    %cst_5 = arith.constant 0.000000e+00 : f32
    %20 = vector.broadcast %cst_5 : f32 to vector<8x17xf32>
    %21 = vector.extract_strided_slice %1 {offsets = [0, 0], sizes = [8, 239], strides = [1, 1]} : vector<8x256xf32> to vector<8x239xf32>
    %22 = tpu.concatenate %20, %21 in 1 : vector<8x17xf32>, vector<8x239xf32> -> vector<8x256xf32>
    %c1_i32_6 = arith.constant 1 : i32
    %23 = vector.broadcast %c1_i32_6 : i32 to vector<8x256xi32>
    %24 = arith.cmpi sge, %18, %23 : vector<8x256xi32>
    %cst_7 = arith.constant 0.000000e+00 : f32
    %25 = vector.broadcast %cst_7 : f32 to vector<8x256xf32>
    %26 = arith.select %24, %22, %25 : vector<8x256xi1>, vector<8x256xf32>
    %c0_8 = arith.constant 0 : index
    %c0_9 = arith.constant 0 : index
    %c0_10 = arith.constant 0 : index
    %27 = vector.load %arg3[%c0_8, %c0_9, %c0_10] : memref<9x8x1xf32, #tpu.memory_space<vmem>>, vector<1x8x1xf32>
    %28 = vector.shape_cast %27 : vector<1x8x1xf32> to vector<8x1xf32>
    %29 = vector.broadcast %28 : vector<8x1xf32> to vector<8x256xf32>
    %30 = arith.mulf %26, %29 : vector<8x256xf32>
    %31 = arith.addf %19, %30 : vector<8x256xf32>
    %cst_11 = arith.constant 0.000000e+00 : f32
    %32 = vector.broadcast %cst_11 : f32 to vector<8x16xf32>
    %33 = vector.extract_strided_slice %1 {offsets = [0, 0], sizes = [8, 240], strides = [1, 1]} : vector<8x256xf32> to vector<8x240xf32>
    %34 = tpu.concatenate %32, %33 in 1 : vector<8x16xf32>, vector<8x240xf32> -> vector<8x256xf32>
    %c1 = arith.constant 1 : index
    %c0_12 = arith.constant 0 : index
    %c0_13 = arith.constant 0 : index
    %35 = vector.load %arg3[%c1, %c0_12, %c0_13] : memref<9x8x1xf32, #tpu.memory_space<vmem>>, vector<1x8x1xf32>
    %36 = vector.shape_cast %35 : vector<1x8x1xf32> to vector<8x1xf32>
    %37 = vector.broadcast %36 : vector<8x1xf32> to vector<8x256xf32>
    %38 = arith.mulf %34, %37 : vector<8x256xf32>
    %39 = arith.addf %31, %38 : vector<8x256xf32>
    %cst_14 = arith.constant 0.000000e+00 : f32
    %40 = vector.broadcast %cst_14 : f32 to vector<8x15xf32>
    %41 = vector.extract_strided_slice %1 {offsets = [0, 0], sizes = [8, 241], strides = [1, 1]} : vector<8x256xf32> to vector<8x241xf32>
    %42 = tpu.concatenate %40, %41 in 1 : vector<8x15xf32>, vector<8x241xf32> -> vector<8x256xf32>
    %c15_i32 = arith.constant 15 : i32
    %43 = vector.broadcast %c15_i32 : i32 to vector<8x256xi32>
    %44 = arith.cmpi slt, %18, %43 : vector<8x256xi32>
    %cst_15 = arith.constant 0.000000e+00 : f32
    %45 = vector.broadcast %cst_15 : f32 to vector<8x256xf32>
    %46 = arith.select %44, %42, %45 : vector<8x256xi1>, vector<8x256xf32>
    %c2 = arith.constant 2 : index
    %c0_16 = arith.constant 0 : index
    %c0_17 = arith.constant 0 : index
    %47 = vector.load %arg3[%c2, %c0_16, %c0_17] : memref<9x8x1xf32, #tpu.memory_space<vmem>>, vector<1x8x1xf32>
    %48 = vector.shape_cast %47 : vector<1x8x1xf32> to vector<8x1xf32>
    %49 = vector.broadcast %48 : vector<8x1xf32> to vector<8x256xf32>
    %50 = arith.mulf %46, %49 : vector<8x256xf32>
    %51 = arith.addf %39, %50 : vector<8x256xf32>
    %cst_18 = arith.constant 0.000000e+00 : f32
    %52 = vector.broadcast %cst_18 : f32 to vector<8x1xf32>
    %53 = vector.extract_strided_slice %1 {offsets = [0, 0], sizes = [8, 255], strides = [1, 1]} : vector<8x256xf32> to vector<8x255xf32>
    %54 = tpu.concatenate %52, %53 in 1 : vector<8x1xf32>, vector<8x255xf32> -> vector<8x256xf32>
    %c1_i32_19 = arith.constant 1 : i32
    %55 = vector.broadcast %c1_i32_19 : i32 to vector<8x256xi32>
    %56 = arith.cmpi sge, %18, %55 : vector<8x256xi32>
    %cst_20 = arith.constant 0.000000e+00 : f32
    %57 = vector.broadcast %cst_20 : f32 to vector<8x256xf32>
    %58 = arith.select %56, %54, %57 : vector<8x256xi1>, vector<8x256xf32>
    %c3 = arith.constant 3 : index
    %c0_21 = arith.constant 0 : index
    %c0_22 = arith.constant 0 : index
    %59 = vector.load %arg3[%c3, %c0_21, %c0_22] : memref<9x8x1xf32, #tpu.memory_space<vmem>>, vector<1x8x1xf32>
    %60 = vector.shape_cast %59 : vector<1x8x1xf32> to vector<8x1xf32>
    %61 = vector.broadcast %60 : vector<8x1xf32> to vector<8x256xf32>
    %62 = arith.mulf %58, %61 : vector<8x256xf32>
    %63 = arith.addf %51, %62 : vector<8x256xf32>
    %c4 = arith.constant 4 : index
    %c0_23 = arith.constant 0 : index
    %c0_24 = arith.constant 0 : index
    %64 = vector.load %arg3[%c4, %c0_23, %c0_24] : memref<9x8x1xf32, #tpu.memory_space<vmem>>, vector<1x8x1xf32>
    %65 = vector.shape_cast %64 : vector<1x8x1xf32> to vector<8x1xf32>
    %66 = vector.broadcast %65 : vector<8x1xf32> to vector<8x256xf32>
    %67 = arith.mulf %1, %66 : vector<8x256xf32>
    %68 = arith.addf %63, %67 : vector<8x256xf32>
    %cst_25 = arith.constant 0.000000e+00 : f32
    %69 = vector.broadcast %cst_25 : f32 to vector<8x1xf32>
    %70 = vector.extract_strided_slice %1 {offsets = [0, 1], sizes = [8, 255], strides = [1, 1]} : vector<8x256xf32> to vector<8x255xf32>
    %71 = tpu.concatenate %70, %69 in 1 : vector<8x255xf32>, vector<8x1xf32> -> vector<8x256xf32>
    %c15_i32_26 = arith.constant 15 : i32
    %72 = vector.broadcast %c15_i32_26 : i32 to vector<8x256xi32>
    %73 = arith.cmpi slt, %18, %72 : vector<8x256xi32>
    %cst_27 = arith.constant 0.000000e+00 : f32
    %74 = vector.broadcast %cst_27 : f32 to vector<8x256xf32>
    %75 = arith.select %73, %71, %74 : vector<8x256xi1>, vector<8x256xf32>
    %c5 = arith.constant 5 : index
    %c0_28 = arith.constant 0 : index
    %c0_29 = arith.constant 0 : index
    %76 = vector.load %arg3[%c5, %c0_28, %c0_29] : memref<9x8x1xf32, #tpu.memory_space<vmem>>, vector<1x8x1xf32>
    %77 = vector.shape_cast %76 : vector<1x8x1xf32> to vector<8x1xf32>
    %78 = vector.broadcast %77 : vector<8x1xf32> to vector<8x256xf32>
    %79 = arith.mulf %75, %78 : vector<8x256xf32>
    %80 = arith.addf %68, %79 : vector<8x256xf32>
    %cst_30 = arith.constant 0.000000e+00 : f32
    %81 = vector.broadcast %cst_30 : f32 to vector<8x15xf32>
    %82 = vector.extract_strided_slice %1 {offsets = [0, 15], sizes = [8, 241], strides = [1, 1]} : vector<8x256xf32> to vector<8x241xf32>
    %83 = tpu.concatenate %82, %81 in 1 : vector<8x241xf32>, vector<8x15xf32> -> vector<8x256xf32>
    %c1_i32_31 = arith.constant 1 : i32
    %84 = vector.broadcast %c1_i32_31 : i32 to vector<8x256xi32>
    %85 = arith.cmpi sge, %18, %84 : vector<8x256xi32>
    %cst_32 = arith.constant 0.000000e+00 : f32
    %86 = vector.broadcast %cst_32 : f32 to vector<8x256xf32>
    %87 = arith.select %85, %83, %86 : vector<8x256xi1>, vector<8x256xf32>
    %c6 = arith.constant 6 : index
    %c0_33 = arith.constant 0 : index
    %c0_34 = arith.constant 0 : index
    %88 = vector.load %arg3[%c6, %c0_33, %c0_34] : memref<9x8x1xf32, #tpu.memory_space<vmem>>, vector<1x8x1xf32>
    %89 = vector.shape_cast %88 : vector<1x8x1xf32> to vector<8x1xf32>
    %90 = vector.broadcast %89 : vector<8x1xf32> to vector<8x256xf32>
    %91 = arith.mulf %87, %90 : vector<8x256xf32>
    %92 = arith.addf %80, %91 : vector<8x256xf32>
    %cst_35 = arith.constant 0.000000e+00 : f32
    %93 = vector.broadcast %cst_35 : f32 to vector<8x16xf32>
    %94 = vector.extract_strided_slice %1 {offsets = [0, 16], sizes = [8, 240], strides = [1, 1]} : vector<8x256xf32> to vector<8x240xf32>
    %95 = tpu.concatenate %94, %93 in 1 : vector<8x240xf32>, vector<8x16xf32> -> vector<8x256xf32>
    %c7 = arith.constant 7 : index
    %c0_36 = arith.constant 0 : index
    %c0_37 = arith.constant 0 : index
    %96 = vector.load %arg3[%c7, %c0_36, %c0_37] : memref<9x8x1xf32, #tpu.memory_space<vmem>>, vector<1x8x1xf32>
    %97 = vector.shape_cast %96 : vector<1x8x1xf32> to vector<8x1xf32>
    %98 = vector.broadcast %97 : vector<8x1xf32> to vector<8x256xf32>
    %99 = arith.mulf %95, %98 : vector<8x256xf32>
    %100 = arith.addf %92, %99 : vector<8x256xf32>
    %cst_38 = arith.constant 0.000000e+00 : f32
    %101 = vector.broadcast %cst_38 : f32 to vector<8x17xf32>
    %102 = vector.extract_strided_slice %1 {offsets = [0, 17], sizes = [8, 239], strides = [1, 1]} : vector<8x256xf32> to vector<8x239xf32>
    %103 = tpu.concatenate %102, %101 in 1 : vector<8x239xf32>, vector<8x17xf32> -> vector<8x256xf32>
    %c15_i32_39 = arith.constant 15 : i32
    %104 = vector.broadcast %c15_i32_39 : i32 to vector<8x256xi32>
    %105 = arith.cmpi slt, %18, %104 : vector<8x256xi32>
    %cst_40 = arith.constant 0.000000e+00 : f32
    %106 = vector.broadcast %cst_40 : f32 to vector<8x256xf32>
    %107 = arith.select %105, %103, %106 : vector<8x256xi1>, vector<8x256xf32>
    %c8 = arith.constant 8 : index
    %c0_41 = arith.constant 0 : index
    %c0_42 = arith.constant 0 : index
    %108 = vector.load %arg3[%c8, %c0_41, %c0_42] : memref<9x8x1xf32, #tpu.memory_space<vmem>>, vector<1x8x1xf32>
    %109 = vector.shape_cast %108 : vector<1x8x1xf32> to vector<8x1xf32>
    %110 = vector.broadcast %109 : vector<8x1xf32> to vector<8x256xf32>
    %111 = arith.mulf %107, %110 : vector<8x256xf32>
    %112 = arith.addf %100, %111 : vector<8x256xf32>
    %c0_43 = arith.constant 0 : index
    %c0_44 = arith.constant 0 : index
    %113 = vector.load %arg4[%c0_43, %c0_44] : memref<8x1xf32, #tpu.memory_space<vmem>>, vector<8x1xf32>
    %114 = vector.broadcast %113 : vector<8x1xf32> to vector<8x256xf32>
    %115 = arith.addf %112, %114 : vector<8x256xf32>
    %116 = arith.maximumf %1, %115 : vector<8x256xf32>
    %c0_45 = arith.constant 0 : index
    %c0_46 = arith.constant 0 : index
    %c0_47 = arith.constant 0 : index
    %117 = vector.load %arg5[%c0_45, %c0_46, %c0_47] : memref<1x8x256xf32, #tpu.memory_space<vmem>>, vector<1x8x256xf32>
    %118 = vector.shape_cast %117 : vector<1x8x256xf32> to vector<8x256xf32>
    %119 = vector.shape_cast %116 : vector<8x256xf32> to vector<1x8x256xf32>
    tpu.vector_store %arg5[%c0_45, %c0_46, %c0_47], %119 {strides = array<i32>} : memref<1x8x256xf32, #tpu.memory_space<vmem>>, vector<1x8x256xf32>,
    return
  }
  func.func @transform_0(%arg0: i32, %arg1: i32) -> (i32, i32, i32) {
    %c0_i32 = arith.constant 0 : i32
    %c0_i32_0 = arith.constant 0 : i32
    return %arg0, %arg1, %c0_i32 : i32, i32, i32
  }
  func.func @transform_1(%arg0: i32, %arg1: i32) -> (i32, i32, i32) {
    %c0_i32 = arith.constant 0 : i32
    %c0_i32_0 = arith.constant 0 : i32
    %c0_i32_1 = arith.constant 0 : i32
    return %c0_i32, %arg1, %c0_i32_0 : i32, i32, i32
  }
  func.func @transform_2(%arg0: i32, %arg1: i32) -> (i32, i32) {
    %c0_i32 = arith.constant 0 : i32
    %c0_i32_0 = arith.constant 0 : i32
    return %arg1, %c0_i32 : i32, i32
  }
  func.func @transform_3(%arg0: i32, %arg1: i32) -> (i32, i32, i32) {
    %c0_i32 = arith.constant 0 : i32
    %c0_i32_0 = arith.constant 0 : i32
    return %arg0, %arg1, %c0_i32 : i32, i32, i32
  }
}

module attributes {stable_mosaic.version = 11 : i64} {
  func.func @_spp_head_kernel(%arg0: i32, %arg1: i32, %arg2: memref<1x8x256xf32, #tpu.memory_space<vmem>>, %arg3: memref<3x1x8x256xf32, #tpu.memory_space<vmem>>, %arg4: memref<16x32xf32, #tpu.memory_space<vmem>>, %arg5: memref<16x1xf32, #tpu.memory_space<vmem>>, %arg6: memref<1x16x256xf32, #tpu.memory_space<vmem>>) attributes {dimension_semantics = [#tpu.dimension_semantics<parallel>, #tpu.dimension_semantics<parallel>], iteration_bounds = array<i64: 2, 1>, scalar_prefetch = 0 : i64, scratch_operands = 0 : i64, tpu.core_type = #tpu.core_type<tc>, window_params = [{transform_indices = @transform_0, window_bounds = array<i64: 1, 8, 256>}, {transform_indices = @transform_1, window_bounds = array<i64: 3, 1, 8, 256>}, {pipeline_mode = #tpu.pipeline_mode<synchronous>, transform_indices = @transform_2, window_bounds = array<i64: 16, 32>}, {pipeline_mode = #tpu.pipeline_mode<synchronous>, transform_indices = @transform_3, window_bounds = array<i64: 16, 1>}, {transform_indices = @transform_4, window_bounds = array<i64: 1, 16, 256>}]} {
    %c0 = arith.constant 0 : index
    %c0_0 = arith.constant 0 : index
    %c0_1 = arith.constant 0 : index
    %0 = vector.load %arg2[%c0, %c0_0, %c0_1] : memref<1x8x256xf32, #tpu.memory_space<vmem>>, vector<1x8x256xf32>
    %1 = vector.shape_cast %0 : vector<1x8x256xf32> to vector<8x256xf32>
    %c0_2 = arith.constant 0 : index
    %c0_3 = arith.constant 0 : index
    %c0_4 = arith.constant 0 : index
    %c0_5 = arith.constant 0 : index
    %2 = vector.load %arg3[%c0_2, %c0_3, %c0_4, %c0_5] : memref<3x1x8x256xf32, #tpu.memory_space<vmem>>, vector<1x1x8x256xf32>
    %3 = vector.shape_cast %2 : vector<1x1x8x256xf32> to vector<8x256xf32>
    %c1 = arith.constant 1 : index
    %c0_6 = arith.constant 0 : index
    %c0_7 = arith.constant 0 : index
    %c0_8 = arith.constant 0 : index
    %4 = vector.load %arg3[%c1, %c0_6, %c0_7, %c0_8] : memref<3x1x8x256xf32, #tpu.memory_space<vmem>>, vector<1x1x8x256xf32>
    %5 = vector.shape_cast %4 : vector<1x1x8x256xf32> to vector<8x256xf32>
    %c2 = arith.constant 2 : index
    %c0_9 = arith.constant 0 : index
    %c0_10 = arith.constant 0 : index
    %c0_11 = arith.constant 0 : index
    %6 = vector.load %arg3[%c2, %c0_9, %c0_10, %c0_11] : memref<3x1x8x256xf32, #tpu.memory_space<vmem>>, vector<1x1x8x256xf32>
    %7 = vector.shape_cast %6 : vector<1x1x8x256xf32> to vector<8x256xf32>
    %8 = tpu.concatenate %1, %3, %5, %7 in 0 : vector<8x256xf32>, vector<8x256xf32>, vector<8x256xf32>, vector<8x256xf32> -> vector<32x256xf32>
    %c0_12 = arith.constant 0 : index
    %c0_13 = arith.constant 0 : index
    %9 = vector.load %arg4[%c0_12, %c0_13] : memref<16x32xf32, #tpu.memory_space<vmem>>, vector<16x32xf32>
    %cst = arith.constant dense<0.000000e+00> : vector<16x256xf32>
    %10 = tpu.matmul %9, %8, %cst {dimension_numbers = #tpu.dot_dimension_numbers<[1], [0], [0], [1], [0, 0, 1, 1], [], []>} : vector<16x32xf32>, vector<32x256xf32>, vector<16x256xf32> -> vector<16x256xf32>
    %c0_14 = arith.constant 0 : index
    %c0_15 = arith.constant 0 : index
    %11 = vector.load %arg5[%c0_14, %c0_15] : memref<16x1xf32, #tpu.memory_space<vmem>>, vector<16x1xf32>
    %12 = vector.broadcast %11 : vector<16x1xf32> to vector<16x256xf32>
    %13 = arith.addf %10, %12 : vector<16x256xf32>
    %c0_16 = arith.constant 0 : index
    %c0_17 = arith.constant 0 : index
    %c0_18 = arith.constant 0 : index
    %14 = vector.load %arg6[%c0_16, %c0_17, %c0_18] : memref<1x16x256xf32, #tpu.memory_space<vmem>>, vector<1x16x256xf32>
    %15 = vector.shape_cast %14 : vector<1x16x256xf32> to vector<16x256xf32>
    %16 = vector.shape_cast %13 : vector<16x256xf32> to vector<1x16x256xf32>
    tpu.vector_store %arg6[%c0_16, %c0_17, %c0_18], %16 {strides = array<i32>} : memref<1x16x256xf32, #tpu.memory_space<vmem>>, vector<1x16x256xf32>,
    return
  }
  func.func @transform_0(%arg0: i32, %arg1: i32) -> (i32, i32, i32) {
    %c0_i32 = arith.constant 0 : i32
    %c0_i32_0 = arith.constant 0 : i32
    return %arg0, %c0_i32, %arg1 : i32, i32, i32
  }
  func.func @transform_1(%arg0: i32, %arg1: i32) -> (i32, i32, i32, i32) {
    %c0_i32 = arith.constant 0 : i32
    %c0_i32_0 = arith.constant 0 : i32
    %c0_i32_1 = arith.constant 0 : i32
    return %c0_i32, %arg0, %c0_i32_0, %arg1 : i32, i32, i32, i32
  }
  func.func @transform_2(%arg0: i32, %arg1: i32) -> (i32, i32) {
    %c0_i32 = arith.constant 0 : i32
    %c0_i32_0 = arith.constant 0 : i32
    %c0_i32_1 = arith.constant 0 : i32
    return %c0_i32, %c0_i32_0 : i32, i32
  }
  func.func @transform_3(%arg0: i32, %arg1: i32) -> (i32, i32) {
    %c0_i32 = arith.constant 0 : i32
    %c0_i32_0 = arith.constant 0 : i32
    %c0_i32_1 = arith.constant 0 : i32
    return %c0_i32, %c0_i32_0 : i32, i32
  }
  func.func @transform_4(%arg0: i32, %arg1: i32) -> (i32, i32, i32) {
    %c0_i32 = arith.constant 0 : i32
    %c0_i32_0 = arith.constant 0 : i32
    return %arg0, %c0_i32, %arg1 : i32, i32, i32
  }
}

module attributes {stable_mosaic.version = 11 : i64} {
  func.func @kernel(%arg0: i32, %arg1: i32, %arg2: memref<1x16x256xf32, #tpu.memory_space<vmem>>, %arg3: memref<9x16x1xf32, #tpu.memory_space<vmem>>, %arg4: memref<16x1xf32, #tpu.memory_space<vmem>>, %arg5: memref<1x16x256xf32, #tpu.memory_space<vmem>>) attributes {dimension_semantics = [#tpu.dimension_semantics<parallel>, #tpu.dimension_semantics<parallel>], iteration_bounds = array<i64: 2, 1>, scalar_prefetch = 0 : i64, scratch_operands = 0 : i64, tpu.core_type = #tpu.core_type<tc>, window_params = [{transform_indices = @transform_0, window_bounds = array<i64: 1, 16, 256>}, {transform_indices = @transform_1, window_bounds = array<i64: 9, 16, 1>}, {transform_indices = @transform_2, window_bounds = array<i64: 16, 1>}, {transform_indices = @transform_3, window_bounds = array<i64: 1, 16, 256>}]} {
    %c0 = arith.constant 0 : index
    %c0_0 = arith.constant 0 : index
    %c0_1 = arith.constant 0 : index
    %0 = vector.load %arg2[%c0, %c0_0, %c0_1] : memref<1x16x256xf32, #tpu.memory_space<vmem>>, vector<1x16x256xf32>
    %1 = vector.shape_cast %0 : vector<1x16x256xf32> to vector<16x256xf32>
    %2 = tpu.iota {dimensions = array<i32: 1>} : vector<16x256xi32>
    %c16_i32 = arith.constant 16 : i32
    %c0_i32 = arith.constant 0 : i32
    %3 = arith.cmpi eq, %c16_i32, %c0_i32 : i32
    %c1_i32 = arith.constant 1 : i32
    %4 = arith.select %3, %c1_i32, %c16_i32 : i32
    %5 = vector.broadcast %4 : i32 to vector<16x256xi32>
    %6 = arith.remsi %2, %5 : vector<16x256xi32>
    %c0_i32_2 = arith.constant 0 : i32
    %7 = vector.broadcast %c0_i32_2 : i32 to vector<16x256xi32>
    %8 = arith.cmpi ne, %6, %7 : vector<16x256xi32>
    %c0_i32_3 = arith.constant 0 : i32
    %9 = vector.broadcast %c0_i32_3 : i32 to vector<16x256xi32>
    %10 = arith.cmpi slt, %6, %9 : vector<16x256xi32>
    %c0_i32_4 = arith.constant 0 : i32
    %11 = arith.cmpi slt, %4, %c0_i32_4 : i32
    %12 = vector.broadcast %11 : i1 to vector<16x256xi1>
    %13 = vector.broadcast %12 : vector<16x256xi1> to vector<16x256xi1>
    %14 = arith.xori %10, %13 : vector<16x256xi1>
    %15 = arith.andi %14, %8 : vector<16x256xi1>
    %16 = vector.broadcast %4 : i32 to vector<16x256xi32>
    %17 = arith.addi %6, %16 : vector<16x256xi32>
    %18 = arith.select %15, %17, %6 : vector<16x256xi1>, vector<16x256xi32>
    %cst = arith.constant 0.000000e+00 : f32
    %19 = vector.broadcast %cst : f32 to vector<16x256xf32>
    %cst_5 = arith.constant 0.000000e+00 : f32
    %20 = vector.broadcast %cst_5 : f32 to vector<16x17xf32>
    %21 = vector.extract_strided_slice %1 {offsets = [0, 0], sizes = [16, 239], strides = [1, 1]} : vector<16x256xf32> to vector<16x239xf32>
    %22 = tpu.concatenate %20, %21 in 1 : vector<16x17xf32>, vector<16x239xf32> -> vector<16x256xf32>
    %c1_i32_6 = arith.constant 1 : i32
    %23 = vector.broadcast %c1_i32_6 : i32 to vector<16x256xi32>
    %24 = arith.cmpi sge, %18, %23 : vector<16x256xi32>
    %cst_7 = arith.constant 0.000000e+00 : f32
    %25 = vector.broadcast %cst_7 : f32 to vector<16x256xf32>
    %26 = arith.select %24, %22, %25 : vector<16x256xi1>, vector<16x256xf32>
    %c0_8 = arith.constant 0 : index
    %c0_9 = arith.constant 0 : index
    %c0_10 = arith.constant 0 : index
    %27 = vector.load %arg3[%c0_8, %c0_9, %c0_10] : memref<9x16x1xf32, #tpu.memory_space<vmem>>, vector<1x16x1xf32>
    %28 = vector.shape_cast %27 : vector<1x16x1xf32> to vector<16x1xf32>
    %29 = vector.broadcast %28 : vector<16x1xf32> to vector<16x256xf32>
    %30 = arith.mulf %26, %29 : vector<16x256xf32>
    %31 = arith.addf %19, %30 : vector<16x256xf32>
    %cst_11 = arith.constant 0.000000e+00 : f32
    %32 = vector.broadcast %cst_11 : f32 to vector<16x16xf32>
    %33 = vector.extract_strided_slice %1 {offsets = [0, 0], sizes = [16, 240], strides = [1, 1]} : vector<16x256xf32> to vector<16x240xf32>
    %34 = tpu.concatenate %32, %33 in 1 : vector<16x16xf32>, vector<16x240xf32> -> vector<16x256xf32>
    %c1 = arith.constant 1 : index
    %c0_12 = arith.constant 0 : index
    %c0_13 = arith.constant 0 : index
    %35 = vector.load %arg3[%c1, %c0_12, %c0_13] : memref<9x16x1xf32, #tpu.memory_space<vmem>>, vector<1x16x1xf32>
    %36 = vector.shape_cast %35 : vector<1x16x1xf32> to vector<16x1xf32>
    %37 = vector.broadcast %36 : vector<16x1xf32> to vector<16x256xf32>
    %38 = arith.mulf %34, %37 : vector<16x256xf32>
    %39 = arith.addf %31, %38 : vector<16x256xf32>
    %cst_14 = arith.constant 0.000000e+00 : f32
    %40 = vector.broadcast %cst_14 : f32 to vector<16x15xf32>
    %41 = vector.extract_strided_slice %1 {offsets = [0, 0], sizes = [16, 241], strides = [1, 1]} : vector<16x256xf32> to vector<16x241xf32>
    %42 = tpu.concatenate %40, %41 in 1 : vector<16x15xf32>, vector<16x241xf32> -> vector<16x256xf32>
    %c15_i32 = arith.constant 15 : i32
    %43 = vector.broadcast %c15_i32 : i32 to vector<16x256xi32>
    %44 = arith.cmpi slt, %18, %43 : vector<16x256xi32>
    %cst_15 = arith.constant 0.000000e+00 : f32
    %45 = vector.broadcast %cst_15 : f32 to vector<16x256xf32>
    %46 = arith.select %44, %42, %45 : vector<16x256xi1>, vector<16x256xf32>
    %c2 = arith.constant 2 : index
    %c0_16 = arith.constant 0 : index
    %c0_17 = arith.constant 0 : index
    %47 = vector.load %arg3[%c2, %c0_16, %c0_17] : memref<9x16x1xf32, #tpu.memory_space<vmem>>, vector<1x16x1xf32>
    %48 = vector.shape_cast %47 : vector<1x16x1xf32> to vector<16x1xf32>
    %49 = vector.broadcast %48 : vector<16x1xf32> to vector<16x256xf32>
    %50 = arith.mulf %46, %49 : vector<16x256xf32>
    %51 = arith.addf %39, %50 : vector<16x256xf32>
    %cst_18 = arith.constant 0.000000e+00 : f32
    %52 = vector.broadcast %cst_18 : f32 to vector<16x1xf32>
    %53 = vector.extract_strided_slice %1 {offsets = [0, 0], sizes = [16, 255], strides = [1, 1]} : vector<16x256xf32> to vector<16x255xf32>
    %54 = tpu.concatenate %52, %53 in 1 : vector<16x1xf32>, vector<16x255xf32> -> vector<16x256xf32>
    %c1_i32_19 = arith.constant 1 : i32
    %55 = vector.broadcast %c1_i32_19 : i32 to vector<16x256xi32>
    %56 = arith.cmpi sge, %18, %55 : vector<16x256xi32>
    %cst_20 = arith.constant 0.000000e+00 : f32
    %57 = vector.broadcast %cst_20 : f32 to vector<16x256xf32>
    %58 = arith.select %56, %54, %57 : vector<16x256xi1>, vector<16x256xf32>
    %c3 = arith.constant 3 : index
    %c0_21 = arith.constant 0 : index
    %c0_22 = arith.constant 0 : index
    %59 = vector.load %arg3[%c3, %c0_21, %c0_22] : memref<9x16x1xf32, #tpu.memory_space<vmem>>, vector<1x16x1xf32>
    %60 = vector.shape_cast %59 : vector<1x16x1xf32> to vector<16x1xf32>
    %61 = vector.broadcast %60 : vector<16x1xf32> to vector<16x256xf32>
    %62 = arith.mulf %58, %61 : vector<16x256xf32>
    %63 = arith.addf %51, %62 : vector<16x256xf32>
    %c4 = arith.constant 4 : index
    %c0_23 = arith.constant 0 : index
    %c0_24 = arith.constant 0 : index
    %64 = vector.load %arg3[%c4, %c0_23, %c0_24] : memref<9x16x1xf32, #tpu.memory_space<vmem>>, vector<1x16x1xf32>
    %65 = vector.shape_cast %64 : vector<1x16x1xf32> to vector<16x1xf32>
    %66 = vector.broadcast %65 : vector<16x1xf32> to vector<16x256xf32>
    %67 = arith.mulf %1, %66 : vector<16x256xf32>
    %68 = arith.addf %63, %67 : vector<16x256xf32>
    %cst_25 = arith.constant 0.000000e+00 : f32
    %69 = vector.broadcast %cst_25 : f32 to vector<16x1xf32>
    %70 = vector.extract_strided_slice %1 {offsets = [0, 1], sizes = [16, 255], strides = [1, 1]} : vector<16x256xf32> to vector<16x255xf32>
    %71 = tpu.concatenate %70, %69 in 1 : vector<16x255xf32>, vector<16x1xf32> -> vector<16x256xf32>
    %c15_i32_26 = arith.constant 15 : i32
    %72 = vector.broadcast %c15_i32_26 : i32 to vector<16x256xi32>
    %73 = arith.cmpi slt, %18, %72 : vector<16x256xi32>
    %cst_27 = arith.constant 0.000000e+00 : f32
    %74 = vector.broadcast %cst_27 : f32 to vector<16x256xf32>
    %75 = arith.select %73, %71, %74 : vector<16x256xi1>, vector<16x256xf32>
    %c5 = arith.constant 5 : index
    %c0_28 = arith.constant 0 : index
    %c0_29 = arith.constant 0 : index
    %76 = vector.load %arg3[%c5, %c0_28, %c0_29] : memref<9x16x1xf32, #tpu.memory_space<vmem>>, vector<1x16x1xf32>
    %77 = vector.shape_cast %76 : vector<1x16x1xf32> to vector<16x1xf32>
    %78 = vector.broadcast %77 : vector<16x1xf32> to vector<16x256xf32>
    %79 = arith.mulf %75, %78 : vector<16x256xf32>
    %80 = arith.addf %68, %79 : vector<16x256xf32>
    %cst_30 = arith.constant 0.000000e+00 : f32
    %81 = vector.broadcast %cst_30 : f32 to vector<16x15xf32>
    %82 = vector.extract_strided_slice %1 {offsets = [0, 15], sizes = [16, 241], strides = [1, 1]} : vector<16x256xf32> to vector<16x241xf32>
    %83 = tpu.concatenate %82, %81 in 1 : vector<16x241xf32>, vector<16x15xf32> -> vector<16x256xf32>
    %c1_i32_31 = arith.constant 1 : i32
    %84 = vector.broadcast %c1_i32_31 : i32 to vector<16x256xi32>
    %85 = arith.cmpi sge, %18, %84 : vector<16x256xi32>
    %cst_32 = arith.constant 0.000000e+00 : f32
    %86 = vector.broadcast %cst_32 : f32 to vector<16x256xf32>
    %87 = arith.select %85, %83, %86 : vector<16x256xi1>, vector<16x256xf32>
    %c6 = arith.constant 6 : index
    %c0_33 = arith.constant 0 : index
    %c0_34 = arith.constant 0 : index
    %88 = vector.load %arg3[%c6, %c0_33, %c0_34] : memref<9x16x1xf32, #tpu.memory_space<vmem>>, vector<1x16x1xf32>
    %89 = vector.shape_cast %88 : vector<1x16x1xf32> to vector<16x1xf32>
    %90 = vector.broadcast %89 : vector<16x1xf32> to vector<16x256xf32>
    %91 = arith.mulf %87, %90 : vector<16x256xf32>
    %92 = arith.addf %80, %91 : vector<16x256xf32>
    %cst_35 = arith.constant 0.000000e+00 : f32
    %93 = vector.broadcast %cst_35 : f32 to vector<16x16xf32>
    %94 = vector.extract_strided_slice %1 {offsets = [0, 16], sizes = [16, 240], strides = [1, 1]} : vector<16x256xf32> to vector<16x240xf32>
    %95 = tpu.concatenate %94, %93 in 1 : vector<16x240xf32>, vector<16x16xf32> -> vector<16x256xf32>
    %c7 = arith.constant 7 : index
    %c0_36 = arith.constant 0 : index
    %c0_37 = arith.constant 0 : index
    %96 = vector.load %arg3[%c7, %c0_36, %c0_37] : memref<9x16x1xf32, #tpu.memory_space<vmem>>, vector<1x16x1xf32>
    %97 = vector.shape_cast %96 : vector<1x16x1xf32> to vector<16x1xf32>
    %98 = vector.broadcast %97 : vector<16x1xf32> to vector<16x256xf32>
    %99 = arith.mulf %95, %98 : vector<16x256xf32>
    %100 = arith.addf %92, %99 : vector<16x256xf32>
    %cst_38 = arith.constant 0.000000e+00 : f32
    %101 = vector.broadcast %cst_38 : f32 to vector<16x17xf32>
    %102 = vector.extract_strided_slice %1 {offsets = [0, 17], sizes = [16, 239], strides = [1, 1]} : vector<16x256xf32> to vector<16x239xf32>
    %103 = tpu.concatenate %102, %101 in 1 : vector<16x239xf32>, vector<16x17xf32> -> vector<16x256xf32>
    %c15_i32_39 = arith.constant 15 : i32
    %104 = vector.broadcast %c15_i32_39 : i32 to vector<16x256xi32>
    %105 = arith.cmpi slt, %18, %104 : vector<16x256xi32>
    %cst_40 = arith.constant 0.000000e+00 : f32
    %106 = vector.broadcast %cst_40 : f32 to vector<16x256xf32>
    %107 = arith.select %105, %103, %106 : vector<16x256xi1>, vector<16x256xf32>
    %c8 = arith.constant 8 : index
    %c0_41 = arith.constant 0 : index
    %c0_42 = arith.constant 0 : index
    %108 = vector.load %arg3[%c8, %c0_41, %c0_42] : memref<9x16x1xf32, #tpu.memory_space<vmem>>, vector<1x16x1xf32>
    %109 = vector.shape_cast %108 : vector<1x16x1xf32> to vector<16x1xf32>
    %110 = vector.broadcast %109 : vector<16x1xf32> to vector<16x256xf32>
    %111 = arith.mulf %107, %110 : vector<16x256xf32>
    %112 = arith.addf %100, %111 : vector<16x256xf32>
    %c0_43 = arith.constant 0 : index
    %c0_44 = arith.constant 0 : index
    %113 = vector.load %arg4[%c0_43, %c0_44] : memref<16x1xf32, #tpu.memory_space<vmem>>, vector<16x1xf32>
    %114 = vector.broadcast %113 : vector<16x1xf32> to vector<16x256xf32>
    %115 = arith.addf %112, %114 : vector<16x256xf32>
    %116 = arith.maximumf %1, %115 : vector<16x256xf32>
    %c0_45 = arith.constant 0 : index
    %c0_46 = arith.constant 0 : index
    %c0_47 = arith.constant 0 : index
    %117 = vector.load %arg5[%c0_45, %c0_46, %c0_47] : memref<1x16x256xf32, #tpu.memory_space<vmem>>, vector<1x16x256xf32>
    %118 = vector.shape_cast %117 : vector<1x16x256xf32> to vector<16x256xf32>
    %119 = vector.shape_cast %116 : vector<16x256xf32> to vector<1x16x256xf32>
    tpu.vector_store %arg5[%c0_45, %c0_46, %c0_47], %119 {strides = array<i32>} : memref<1x16x256xf32, #tpu.memory_space<vmem>>, vector<1x16x256xf32>,
    return
  }
  func.func @transform_0(%arg0: i32, %arg1: i32) -> (i32, i32, i32) {
    %c0_i32 = arith.constant 0 : i32
    %c0_i32_0 = arith.constant 0 : i32
    return %arg0, %arg1, %c0_i32 : i32, i32, i32
  }
  func.func @transform_1(%arg0: i32, %arg1: i32) -> (i32, i32, i32) {
    %c0_i32 = arith.constant 0 : i32
    %c0_i32_0 = arith.constant 0 : i32
    %c0_i32_1 = arith.constant 0 : i32
    return %c0_i32, %arg1, %c0_i32_0 : i32, i32, i32
  }
  func.func @transform_2(%arg0: i32, %arg1: i32) -> (i32, i32) {
    %c0_i32 = arith.constant 0 : i32
    %c0_i32_0 = arith.constant 0 : i32
    return %arg1, %c0_i32 : i32, i32
  }
  func.func @transform_3(%arg0: i32, %arg1: i32) -> (i32, i32, i32) {
    %c0_i32 = arith.constant 0 : i32
    %c0_i32_0 = arith.constant 0 : i32
    return %arg0, %arg1, %c0_i32 : i32, i32, i32
  }
}

</mosaic_0001>

<bundles_post_ra>
// kernel: spp_forward.5
= control target key start
LH: loop header
LB: loop body
LE: loop exit
PB: predicated region body
PF: predicated region fallthrough
CT: control target
= control target key end

     0   :  { %s476_s12 = smov 0   ;;  %s478_s13 = smov 0   ;;  %s515_s0 = inlined_call_operand.vmem [shape: f32[2,16,256], index: 0, kind: input, shape index: {}]   ;;  %s516_s1 = inlined_call_operand.vmem [shape: f32[8,16], index: 1, kind: input, shape index: {}]   ;;  %s517_s2 = inlined_call_operand.vmem [shape: f32[8,1], index: 2, kind: input, shape index: {}]   ;;  %s518_s3 = inlined_call_operand.vmem [shape: f32[2,8,256], index: 3, kind: output, shape index: {}]  }
   0x1   :  { %s480_s14 = smov 0  }
   0x2 LB: > { %s25_s15 = sadd.s32 1, %s448_s13  ;;  %p389_p0 = scmp.ge.s32.totalorder %s452_s14, 1  ;;  %s452_s14 = sphi %s480_s14, %s13_s14   ;;  %s448_s13 = sphi %s478_s13, %s520_s13   ;;  %s444_s12 = sphi %s476_s12, %s519_s12  }
   0x3   : > { %p27_p1 = scmp.ge.s32.totalorder %s25_s15, 2  ;;  %p158_p2 = scmp.lt.s32.totalorder %s452_s14, 3 }
   0x5   : > { %s522_s15 = smov (%p27_p1, %s25_s15), 0  ;;  %p159_p3 = pnand %p389_p0, %p158_p2 }
   0x6   : > { %p191_p4 = scmp.lt.s32.totalorder (!%p159_p3), %s444_s12, 1  ;;  %v215_v0 = vld [vmem:[%s517_s2] sm:$0xff] (!%p159_p3)  ;;  %v454_v1 = vmov (!%p159_p3), 0.0   ;;  %v455_v2 = vmov (!%p159_p3), 0   ;;  %vm221_vm0 = vcmask (!%p159_p3), 130048  }
   0x7   : > { %162 = sbr.rel (%p159_p3) target bundleno = 240 (0xf0), region = 32  ;;  %289 = vmatprep.mubr.f32.mxu0 (!%p159_p3), %v454_v1  ;;  %429 = vset.pattern.permute.xlu0 (!%p159_p3), %v455_v2  ;;  %v210_v9 = vld [vmem:[%s516_s1] sm:$0xff] (!%p159_p3) }
   0x8   : > { %218 = vperm.xlu0 (!%p159_p3), %429, %v215_v0  }
   0xe   : > { %s524_s12 = smov (!%p191_p4, %s444_s12), 1 }
   0xf   : > { %s397_s18 = sshll.u32 %s524_s12, 5  ;;  %s398_s24 = sshll.u32 %s524_s12, 4 }
  0x10   : > { %s198_s21 = scalar_lea.vmem %s515_s0, %s397_s18  ;;  %s208_s27 = scalar_lea.vmem %s518_s3, %s398_s24 }
  0x11   : > { %v212_v3 = vld [vmem:[%s198_s21 + $0x8] sm:$0xff]  ;;  %v214_v4 = vld [vmem:[%s198_s21 + $0x18] sm:$0xff]  ;;  %v211_v5 = vld [vmem:[%s198_s21] sm:$0xff] }
  0x12   : > { %v399_v6 = vpack.c.bf16 %v214_v4, %v212_v3  ;;  %v213_v7 = vld [vmem:[%s198_s21 + $0x10] sm:$0xff] }
  0x13   : > { %v401_v8 = vpack.c.bf16 %v213_v7, %v211_v5 }
  0x14   : > { %400 = vmatprep.subr.bf16.mxu0 %v399_v6 }
  0x15   : > { %402 = vmatpush1.bf16.msra.mxu0 %v401_v8 }
  0x18   : > { %394 = vmatmul.mubr.msk.f32.vlgmr.msra.gmra.mrb[0].mxu0 %vm221_vm0, %v210_v9 }
  0x87   : > { %v219_v10 = vpop.permute.xlu0 %218 }
  0xeb   : > { %v291_v11 = vpop.f32.mrb[0].mxu0 }
  0xec   : > { %v292_v12 = vadd.f32 %v291_v11, %v219_v10  ;;  %v293_v13 = vpop.f32.mrb[1].mxu0 }
  0xed   : > { %v294_v14 = vadd.f32 %v293_v13, %v219_v10 }
  0xee   : > { %296 = vst [vmem:[%s208_s27] sm:$0xff] %v292_v12 }
  0xef   : > { %297 = vst [vmem:[%s208_s27 + $0x8] sm:$0xff] %v294_v14 }
  0xf0 PF: > { %s13_s14 = sadd.s32 1, %s452_s14   ;;  %s519_s12 = smov %s448_s13 }
  0xf1   : > { %p10_p5 = scmp.ge.s32.totalorder %s13_s14, 4   ;;  %s520_s13 = smov %s522_s15 }
  0xf3   :  { %12 = sbr.rel (!%p10_p5) target bundleno = 2 (0x2), region = 62 }

// kernel: spp_forward.6
= control target key start
LH: loop header
LB: loop body
LE: loop exit
PB: predicated region body
PF: predicated region fallthrough
CT: control target
= control target key end

     0   :  { %s704_s12 = smov 0   ;;  %s706_s13 = smov 0   ;;  %s838_s0 = inlined_call_operand.vmem [shape: f32[2,8,256], index: 0, kind: input, shape index: {}]   ;;  %s839_s1 = inlined_call_operand.vmem [shape: f32[9,8,1], index: 1, kind: input, shape index: {}]   ;;  %s840_s2 = inlined_call_operand.vmem [shape: f32[8,1], index: 2, kind: input, shape index: {}]   ;;  %s841_s3 = inlined_call_operand.vmem [shape: f32[2,8,256], index: 3, kind: output, shape index: {}]  }
   0x1   :  { %s708_s14 = smov 0  }
   0x2 LB: > { %s25_s15 = sadd.s32 1, %s669_s13  ;;  %p599_p0 = scmp.ge.s32.totalorder %s673_s14, 1  ;;  %s673_s14 = sphi %s708_s14, %s13_s14   ;;  %s669_s13 = sphi %s706_s13, %s851_s13   ;;  %s665_s12 = sphi %s704_s12, %s850_s12  }
   0x3   : > { %p27_p1 = scmp.ge.s32.totalorder %s25_s15, 2  ;;  %p175_p2 = scmp.lt.s32.totalorder %s673_s14, 3 }
   0x5   : > { %s853_s15 = smov (%p27_p1, %s25_s15), 0  ;;  %p176_p3 = pnand %p599_p0, %p175_p2 }
   0x6   : > { %v605_v0 = vld [vmem:[%s839_s1 + $0x10] sm:$0xff] (!%p176_p3)  ;;  %v285_v1 = vld [vmem:[%s839_s1] sm:$0xff] (!%p176_p3)  ;;  %p215_p4 = scmp.lt.s32.totalorder (!%p176_p3), %s665_s12, 1  ;;  %v675_v2 = vmov (!%p176_p3), 0   ;;  %v606_v3 = vld [vmem:[%s839_s1 + $0x18] sm:$0xff] (!%p176_p3)  ;;  %s676_s28 = smov (!%p176_p3), 17   ;;  %v243_v19 = vlaneseq (!%p176_p3) }
   0x7   : > { %179 = sbr.rel (%p176_p3) target bundleno = 197 (0xc5), region = 32  ;;  %650 = vset.pattern.permute.xlu1 (!%p176_p3), %v675_v2  ;;  %649 = vset.pattern.permute.xlu0 (!%p176_p3), %v675_v2  ;;  %v604_v4 = vld [vmem:[%s839_s1 + $0x8] sm:$0xff] (!%p176_p3)  ;;  %s677_s29 = smov (!%p176_p3), 16   ;;  %v607_v7 = vld [vmem:[%s839_s1 + $0x20] sm:$0xff] (!%p176_p3)  ;;  %v610_v9 = vld [vmem:[%s839_s1 + $0x38] sm:$0xff] (!%p176_p3)  ;;  %vm276_vm0 = vcmask (!%p176_p3), 138240  }
   0x8   : > { %332 = vperm.xlu1 (!%p176_p3), %650, %v605_v0   ;;  %288 = vperm.xlu0 (!%p176_p3), %649, %v285_v1   ;;  %s678_s5 = smov (!%p176_p3), 15   ;;  %v608_v8 = vld [vmem:[%s839_s1 + $0x28] sm:$0xff] (!%p176_p3)  ;;  %s679_s8 = smov (!%p176_p3), 1   ;;  %v609_v10 = vld [vmem:[%s839_s1 + $0x30] sm:$0xff] (!%p176_p3)  ;;  %v611_v11 = vld [vmem:[%s839_s1 + $0x40] sm:$0xff] (!%p176_p3)  ;;  %v244_v22 = vand.u32 (!%p176_p3), 127, %v243_v19 }
   0x9   : > { %s680_s17 = smov (!%p176_p3), 127   ;;  %s681_s20 = smov (!%p176_p3), 113   ;;  %v458_v12 = vld [vmem:[%s840_s2] sm:$0xff] (!%p176_p3)  ;;  %vm299_vm1 = vcmask (!%p176_p3), 130048   ;;  %vm319_vm2 = vcmask (!%p176_p3), 121856   ;;  %vm343_vm7 = vcmask (!%p176_p3), 7168  }
   0xa   : > { %s682_s21 = smov (!%p176_p3), 112   ;;  %s683_s25 = smov (!%p176_p3), 111   ;;  %v245_v25 = vadd.s32 (!%p176_p3), 128, %v244_v22  ;;  %v250_v28 = vand.u32 (!%p176_p3), 15, %v244_v22  ;;  %vm376_vm8 = vcmask (!%p176_p3), 1039360   ;;  %vm398_vm9 = vcmask (!%p176_p3), 924672  }
   0xb   : > { %vm420_vm10 = vcmask (!%p176_p3), 916480   ;;  %vm440_vm11 = vcmask (!%p176_p3), 908288  }
   0xc   : > { %354 = vperm.xlu1 (!%p176_p3), %650, %v606_v3   ;;  %308 = vperm.xlu0 (!%p176_p3), %649, %v604_v4   ;;  %v257_v29 = vand.u32 (!%p176_p3), 15, %v245_v25  ;;  %vm780_vm3 = vcmp.ge.s32.totalorder (!%p176_p3), %v250_v28, 1  ;;  %vm788_vm5 = vcmp.lt.s32.totalorder (!%p176_p3), %v250_v28, 15 }
   0xe   : > { %s855_s12 = smov (!%p215_p4, %s665_s12), 1  ;;  %vm784_vm4 = vcmp.ge.s32.totalorder %v257_v29, 1  ;;  %vm792_vm6 = vcmp.lt.s32.totalorder %v257_v29, 15 }
   0xf   : > { %s614_s24 = sshll.u32 %s855_s12, 4 }
  0x10   : > { %s223_s27 = scalar_lea.vmem %s838_s0, %s614_s24 }
  0x11   : > { %v742_v5 = vld [vmem:[%s223_s27 + $0x8] sm:$0xff]  ;;  %v744_v6 = vld [vmem:[%s223_s27] sm:$0xff] }
  0x12   : > { %274 = vrot.lane.b32.xlu1 %v742_v5, %s676_s28  ;;  %272 = vrot.lane.b32.xlu0 %v744_v6, %s676_s28  ;;  %s240_s28 = scalar_lea.vmem %s841_s3, %s614_s24 }
  0x16   : > { %297 = vrot.lane.b32.xlu1 %v742_v5, %s677_s29  ;;  %295 = vrot.lane.b32.xlu0 %v744_v6, %s677_s29 }
  0x1a   : > { %315 = vrot.lane.b32.xlu1 %v744_v6, %s678_s5  ;;  %365 = vperm.xlu0 %649, %v607_v7  }
  0x1e   : > { %387 = vperm.xlu1 %650, %v608_v8   ;;  %317 = vrot.lane.b32.xlu0 %v742_v5, %s678_s5 }
  0x22   : > { %341 = vrot.lane.b32.xlu1 %v742_v5, %s679_s8  ;;  %339 = vrot.lane.b32.xlu0 %v744_v6, %s679_s8 }
  0x26   : > { %429 = vperm.xlu1 %650, %v610_v9   ;;  %409 = vperm.xlu0 %649, %v609_v10  }
  0x2a   : > { %374 = vrot.lane.b32.xlu1 %v742_v5, %s680_s17  ;;  %372 = vrot.lane.b32.xlu0 %v744_v6, %s680_s17 }
  0x2e   : > { %394 = vrot.lane.b32.xlu1 %v744_v6, %s681_s20  ;;  %451 = vperm.xlu0 %649, %v611_v11  }
  0x32   : > { %416 = vrot.lane.b32.xlu1 %v744_v6, %s682_s21  ;;  %396 = vrot.lane.b32.xlu0 %v742_v5, %s681_s20 }
  0x36   : > { %461 = vperm.xlu1 %650, %v458_v12   ;;  %418 = vrot.lane.b32.xlu0 %v742_v5, %s682_s21 }
  0x3a   : > { %438 = vrot.lane.b32.xlu1 %v742_v5, %s683_s25  ;;  %436 = vrot.lane.b32.xlu0 %v744_v6, %s683_s25 }
  0x87   : > { %v333_v13 = vpop.permute.xlu1 %332  ;;  %v289_v14 = vpop.permute.xlu0 %288 }
  0x8b   : > { %v355_v15 = vpop.permute.xlu1 %354  ;;  %v309_v16 = vpop.permute.xlu0 %308 }
  0x8f   : > { %v275_v17 = vpop.permute.xlu1 %274  ;;  %v273_v18 = vpop.permute.xlu0 %272 }
  0x90   : > { %v277_v35 = vsel %vm276_vm0, %v273_v18, %v275_v17  ;;  %v280_v36 = vsel %vm276_vm0, 0.0, %v273_v18 }
  0x91   : > { %v283_v44 = vsel %vm780_vm3, %v280_v36, 0.0  ;;  %v284_v45 = vsel %vm784_vm4, %v277_v35, 0.0 }
  0x92   : > { %v291_v52 = vmul.f32 %v289_v14, %v283_v44  ;;  %v292_v53 = vmul.f32 %v289_v14, %v284_v45 }
  0x93   : > { %v298_v20 = vpop.permute.xlu1 %297  ;;  %v296_v21 = vpop.permute.xlu0 %295 }
  0x94   : > { %v300_v38 = vsel %vm299_vm1, %v296_v21, %v298_v20  ;;  %v303_v39 = vsel %vm299_vm1, 0.0, %v296_v21 }
  0x95   : > { %v311_v48 = vmul.f32 %v309_v16, %v303_v39  ;;  %v312_v49 = vmul.f32 %v309_v16, %v300_v38 }
  0x97   : > { %v316_v23 = vpop.permute.xlu1 %315  ;;  %v313_v60 = vadd.f32 %v311_v48, %v291_v52  ;;  %v314_v61 = vadd.f32 %v312_v49, %v292_v53 }
  0x98   : > { %v323_v40 = vsel %vm319_vm2, 0.0, %v316_v23 }
  0x99   : > { %v366_v24 = vpop.permute.xlu0 %365  ;;  %v326_v50 = vsel %vm788_vm5, %v323_v40, 0.0 }
  0x9a   : > { %v335_v58 = vmul.f32 %v333_v13, %v326_v50  ;;  %v368_v12 = vmul.f32 %v366_v24, %v744_v6 }
  0x9c   : > { %v337_v4 = vadd.f32 %v335_v58, %v313_v60 }
  0x9d   : > { %v388_v26 = vpop.permute.xlu1 %387  ;;  %v318_v27 = vpop.permute.xlu0 %317 }
  0x9e   : > { %v320_v41 = vsel %vm319_vm2, %v316_v23, %v318_v27 }
  0x9f   : > { %v327_v51 = vsel %vm792_vm6, %v320_v41, 0.0 }
  0xa0   : > { %v336_v59 = vmul.f32 %v333_v13, %v327_v51  ;;  %v369_v13 = vmul.f32 %v366_v24, %v742_v5 }
  0xa1   : > { %v342_v30 = vpop.permute.xlu1 %341  ;;  %v340_v31 = vpop.permute.xlu0 %339 }
  0xa2   : > { %v344_v46 = vsel %vm343_vm7, %v340_v31, %v342_v30  ;;  %v347_v47 = vsel %vm343_vm7, 0.0, %v340_v31  ;;  %v338_v7 = vadd.f32 %v336_v59, %v314_v61 }
  0xa3   : > { %v348_v54 = vsel %vm780_vm3, %v347_v47, 0.0  ;;  %v349_v55 = vsel %vm784_vm4, %v344_v46, 0.0 }
  0xa4   : > { %v357_v62 = vmul.f32 %v355_v15, %v348_v54  ;;  %v358_v63 = vmul.f32 %v355_v15, %v349_v55 }
  0xa5   : > { %v430_v42 = vpop.permute.xlu1 %429  ;;  %v410_v43 = vpop.permute.xlu0 %409 }
  0xa6   : > { %v359_v10 = vadd.f32 %v357_v62, %v337_v4  ;;  %v360_v11 = vadd.f32 %v358_v63, %v338_v7 }
  0xa8   : > { %v371_v22 = vadd.f32 %v369_v13, %v360_v11  ;;  %v370_v23 = vadd.f32 %v368_v12, %v359_v10 }
  0xa9   : > { %v375_v56 = vpop.permute.xlu1 %374  ;;  %v373_v57 = vpop.permute.xlu0 %372 }
  0xaa   : > { %v380_v0 = vsel %vm376_vm8, %v375_v56, 0.0  ;;  %v377_v1 = vsel %vm376_vm8, %v373_v57, %v375_v56 }
  0xab   : > { %v382_v8 = vsel %vm792_vm6, %v380_v0, 0.0  ;;  %v381_v9 = vsel %vm788_vm5, %v377_v1, 0.0 }
  0xac   : > { %v391_v16 = vmul.f32 %v388_v26, %v382_v8  ;;  %v390_v17 = vmul.f32 %v388_v26, %v381_v9 }
  0xad   : > { %v395_v2 = vpop.permute.xlu1 %394  ;;  %v452_v3 = vpop.permute.xlu0 %451 }
  0xae   : > { %v393_v24 = vadd.f32 %v391_v16, %v371_v22  ;;  %v392_v30 = vadd.f32 %v390_v17, %v370_v23 }
  0xb1   : > { %v417_v14 = vpop.permute.xlu1 %416  ;;  %v397_v15 = vpop.permute.xlu0 %396 }
  0xb2   : > { %v399_v18 = vsel %vm398_vm9, %v395_v2, %v397_v15  ;;  %v402_v19 = vsel %vm398_vm9, %v397_v15, 0.0 }
  0xb3   : > { %v403_v20 = vsel %vm780_vm3, %v399_v18, 0.0  ;;  %v404_v21 = vsel %vm784_vm4, %v402_v19, 0.0 }
  0xb4   : > { %v412_v25 = vmul.f32 %v410_v43, %v403_v20  ;;  %v413_v27 = vmul.f32 %v410_v43, %v404_v21 }
  0xb5   : > { %v462_v28 = vpop.permute.xlu1 %461  ;;  %v419_v29 = vpop.permute.xlu0 %418 }
  0xb6   : > { %v421_v31 = vsel %vm420_vm10, %v417_v14, %v419_v29  ;;  %v424_v35 = vsel %vm420_vm10, %v419_v29, 0.0  ;;  %v414_v26 = vadd.f32 %v412_v25, %v392_v30  ;;  %v415_v36 = vadd.f32 %v413_v27, %v393_v24 }
  0xb7   : > { %v432_v38 = vmul.f32 %v430_v42, %v421_v31  ;;  %v433_v32 = vmul.f32 %v430_v42, %v424_v35 }
  0xb9   : > { %v439_v39 = vpop.permute.xlu1 %438  ;;  %v437_v33 = vpop.permute.xlu0 %436  ;;  %v434_v45 = vadd.f32 %v432_v38, %v414_v26  ;;  %v435_v46 = vadd.f32 %v433_v32, %v415_v36 }
  0xba   : > { %v444_v40 = vsel %vm440_vm11, %v439_v39, 0.0  ;;  %v441_v41 = vsel %vm440_vm11, %v437_v33, %v439_v39 }
  0xbb   : > { %v446_v44 = vsel %vm792_vm6, %v444_v40, 0.0  ;;  %v445_v43 = vsel %vm788_vm5, %v441_v41, 0.0 }
  0xbc   : > { %v455_v47 = vmul.f32 %v452_v3, %v446_v44  ;;  %v454_v48 = vmul.f32 %v452_v3, %v445_v43 }
  0xbe   : > { %v457_v49 = vadd.f32 %v455_v47, %v435_v46  ;;  %v456_v50 = vadd.f32 %v454_v48, %v434_v45 }
  0xc0   : > { %v465_v51 = vadd.f32 %v462_v28, %v457_v49  ;;  %v464_v52 = vadd.f32 %v462_v28, %v456_v50 }
  0xc2   : > { %v467_v42 = vmax.f32 %v742_v5, %v465_v51  ;;  %v466_v37 = vmax.f32 %v744_v6, %v464_v52 }
  0xc4   : > { %469 = vst [vmem:[%s240_s28 + $0x8] sm:$0xff] %v467_v42  ;;  %468 = vst [vmem:[%s240_s28] sm:$0xff] %v466_v37 }
  0xc5 PF: > { %s13_s14 = sadd.s32 1, %s673_s14   ;;  %s850_s12 = smov %s669_s13 }
  0xc6   : > { %p10_p5 = scmp.ge.s32.totalorder %s13_s14, 4   ;;  %s851_s13 = smov %s853_s15 }
  0xc8   :  { %12 = sbr.rel (!%p10_p5) target bundleno = 2 (0x2), region = 76 }

// kernel: spp_forward.7
= control target key start
LH: loop header
LB: loop body
LE: loop exit
PB: predicated region body
PF: predicated region fallthrough
CT: control target
= control target key end

     0   :  { %s641_s10 = smov 127   ;;  %s642_s15 = smov 1   ;;  %v12_v4 = vlaneseq  ;;  %vm51_vm0 = vcmask 1039360   ;;  %vm78_vm1 = vcmask 7168   ;;  %vm105_vm6 = vcmask 1031168   ;;  %s1099_s0 = inlined_call_operand.vmem [shape: f32[16,256], index: 0, kind: input, shape index: {}]   ;;  %s1100_s1 = inlined_call_operand.vmem [shape: f32[3,16,256], index: 1, kind: output, shape index: {}]  }
   0x1   :  { %v662_v0 = vld [vmem:[%s1099_s0 + $0x10] sm:$0xff]  ;;  %v667_v1 = vld [vmem:[%s1099_s0] sm:$0xff]  ;;  %v676_v2 = vld [vmem:[%s1099_s0 + $0x18] sm:$0xff]  ;;  %s644_s16 = smov 2   ;;  %vm132_vm9 = vcmask 15360   ;;  %s645_s17 = smov 112  }
   0x2   :  { %47 = vrot.lane.b32.xlu1 %v662_v0, %s641_s10  ;;  %43 = vrot.lane.b32.xlu0 %v667_v1, %s641_s10  ;;  %v681_v3 = vld [vmem:[%s1099_s0 + $0x8] sm:$0xff]  ;;  %s643_s0 = smov 126   ;;  %v13_v7 = vand.u32 127, %v12_v4  ;;  %s646_s18 = smov 16   ;;  %vm163_vm12 = vcmask 916480   ;;  %vm184_vm13 = vcmask 130048  }
   0x3   :  { %s647_s19 = smov 96   ;;  %s648_s20 = smov 32   ;;  %vm205_vm14 = vcmask 785408   ;;  %vm226_vm15 = vcmask 261120  }
   0x4   :  { %v14_v10 = vadd.s32 128, %v13_v7  ;;  %v711_v13 = vand.u32 15, %v13_v7 }
   0x6   :  { %49 = vrot.lane.b32.xlu1 %v676_v2, %s641_s10  ;;  %45 = vrot.lane.b32.xlu0 %v681_v3, %s641_s10  ;;  %v713_v14 = vand.u32 15, %v14_v10  ;;  %vm60_vm2 = vcmp.lt.s32.totalorder %v711_v13, 15  ;;  %vm87_vm4 = vcmp.ge.s32.totalorder %v711_v13, 1  ;;  %vm114_vm7 = vcmp.lt.s32.totalorder %v711_v13, 14 }
   0x7   :  { %vm141_vm10 = vcmp.ge.s32.totalorder %v711_v13, 2 }
   0x8   :  { %vm61_vm3 = vcmp.lt.s32.totalorder %v713_v14, 15  ;;  %vm88_vm5 = vcmp.ge.s32.totalorder %v713_v14, 1  ;;  %vm115_vm8 = vcmp.lt.s32.totalorder %v713_v14, 14  ;;  %vm142_vm11 = vcmp.ge.s32.totalorder %v713_v14, 2 }
   0xa   :  { %72 = vrot.lane.b32.xlu1 %v681_v3, %s642_s15  ;;  %70 = vrot.lane.b32.xlu0 %v667_v1, %s642_s15 }
   0xe   :  { %76 = vrot.lane.b32.xlu1 %v676_v2, %s642_s15  ;;  %74 = vrot.lane.b32.xlu0 %v662_v0, %s642_s15 }
  0x12   :  { %99 = vrot.lane.b32.xlu1 %v681_v3, %s643_s0  ;;  %97 = vrot.lane.b32.xlu0 %v667_v1, %s643_s0 }
  0x16   :  { %103 = vrot.lane.b32.xlu1 %v676_v2, %s643_s0  ;;  %101 = vrot.lane.b32.xlu0 %v662_v0, %s643_s0 }
  0x1a   :  { %126 = vrot.lane.b32.xlu1 %v681_v3, %s644_s16  ;;  %124 = vrot.lane.b32.xlu0 %v667_v1, %s644_s16 }
  0x1e   :  { %130 = vrot.lane.b32.xlu1 %v676_v2, %s644_s16  ;;  %128 = vrot.lane.b32.xlu0 %v662_v0, %s644_s16 }
  0x74   :  { %v48_v5 = vpop.permute.xlu1 %47  ;;  %v44_v6 = vpop.permute.xlu0 %43 }
  0x78   :  { %v50_v8 = vpop.permute.xlu1 %49  ;;  %v46_v9 = vpop.permute.xlu0 %45 }
  0x79   :  { %v52_v17 = vsel %vm51_vm0, %v44_v6, %v46_v9  ;;  %v58_v18 = vsel %vm51_vm0, %v46_v9, -inf  ;;  %v53_v21 = vsel %vm51_vm0, %v48_v5, %v50_v8  ;;  %v59_v22 = vsel %vm51_vm0, %v50_v8, -inf }
  0x7a   :  { %v62_v25 = vsel %vm60_vm2, %v52_v17, -inf  ;;  %v63_v26 = vsel %vm61_vm3, %v58_v18, -inf  ;;  %v64_v29 = vsel %vm60_vm2, %v53_v21, -inf  ;;  %v65_v30 = vsel %vm61_vm3, %v59_v22, -inf }
  0x7b   :  { %v66_v35 = vmax.f32 %v667_v1, %v62_v25  ;;  %v67_v36 = vmax.f32 %v681_v3, %v63_v26  ;;  %v68_v45 = vmax.f32 %v662_v0, %v64_v29  ;;  %v69_v46 = vmax.f32 %v676_v2, %v65_v30 }
  0x7c   :  { %v73_v11 = vpop.permute.xlu1 %72  ;;  %v71_v12 = vpop.permute.xlu0 %70 }
  0x7d   :  { %v79_v23 = vsel %vm78_vm1, %v71_v12, %v73_v11  ;;  %v85_v24 = vsel %vm78_vm1, -inf, %v71_v12 }
  0x7e   :  { %v89_v31 = vsel %vm87_vm4, %v85_v24, -inf  ;;  %v90_v32 = vsel %vm88_vm5, %v79_v23, -inf }
  0x7f   :  { %v93_v41 = vmax.f32 %v66_v35, %v89_v31  ;;  %v94_v42 = vmax.f32 %v67_v36, %v90_v32 }
  0x80   :  { %v77_v15 = vpop.permute.xlu1 %76  ;;  %v75_v16 = vpop.permute.xlu0 %74 }
  0x81   :  { %v80_v37 = vsel %vm78_vm1, %v75_v16, %v77_v15  ;;  %v86_v38 = vsel %vm78_vm1, -inf, %v75_v16 }
  0x82   :  { %v91_v47 = vsel %vm87_vm4, %v86_v38, -inf  ;;  %v92_v48 = vsel %vm88_vm5, %v80_v37, -inf }
  0x83   :  { %v95_v59 = vmax.f32 %v68_v45, %v91_v47  ;;  %v96_v60 = vmax.f32 %v69_v46, %v92_v48 }
  0x84   :  { %v100_v19 = vpop.permute.xlu1 %99  ;;  %v98_v20 = vpop.permute.xlu0 %97 }
  0x85   :  { %v112_v27 = vsel %vm105_vm6, %v100_v19, -inf  ;;  %v106_v28 = vsel %vm105_vm6, %v98_v20, %v100_v19 }
  0x86   :  { %v117_v39 = vsel %vm115_vm8, %v112_v27, -inf  ;;  %v116_v40 = vsel %vm114_vm7, %v106_v28, -inf }
  0x87   :  { %v121_v51 = vmax.f32 %v94_v42, %v117_v39  ;;  %v120_v52 = vmax.f32 %v93_v41, %v116_v40 }
  0x88   :  { %v104_v33 = vpop.permute.xlu1 %103  ;;  %v102_v34 = vpop.permute.xlu0 %101 }
  0x89   :  { %v113_v43 = vsel %vm105_vm6, %v104_v33, -inf  ;;  %v107_v44 = vsel %vm105_vm6, %v102_v34, %v104_v33 }
  0x8a   :  { %v119_v55 = vsel %vm115_vm8, %v113_v43, -inf  ;;  %v118_v56 = vsel %vm114_vm7, %v107_v44, -inf }
  0x8b   :  { %v123_v1 = vmax.f32 %v96_v60, %v119_v55  ;;  %v122_v2 = vmax.f32 %v95_v59, %v118_v56 }
  0x8c   :  { %v127_v49 = vpop.permute.xlu1 %126  ;;  %v125_v50 = vpop.permute.xlu0 %124 }
  0x8d   :  { %v133_v53 = vsel %vm132_vm9, %v125_v50, %v127_v49  ;;  %v139_v54 = vsel %vm132_vm9, -inf, %v125_v50 }
  0x8e   :  { %v143_v57 = vsel %vm141_vm10, %v139_v54, -inf  ;;  %v144_v58 = vsel %vm142_vm11, %v133_v53, -inf }
  0x8f   :  { %v147_v61 = vmax.f32 %v120_v52, %v143_v57  ;;  %v148_v62 = vmax.f32 %v121_v51, %v144_v58 }
  0x90   :  { %v131_v63 = vpop.permute.xlu1 %130  ;;  %v129_v0 = vpop.permute.xlu0 %128 }
  0x91   :  { %v134_v3 = vsel %vm132_vm9, %v129_v0, %v131_v63  ;;  %v140_v4 = vsel %vm132_vm9, -inf, %v129_v0  ;;  %155 = vrot.lane.b32.xlu0 %v147_v61, %s645_s17  ;;  %157 = vrot.lane.b32.xlu1 %v148_v62, %s645_s17 }
  0x92   :  { %v145_v5 = vsel %vm141_vm10, %v140_v4, -inf  ;;  %v146_v6 = vsel %vm142_vm11, %v134_v3, -inf }
  0x93   :  { %v149_v7 = vmax.f32 %v122_v2, %v145_v5  ;;  %v150_v8 = vmax.f32 %v123_v1, %v146_v6 }
  0x95   :  { %159 = vrot.lane.b32.xlu0 %v149_v7, %s645_s17  ;;  %161 = vrot.lane.b32.xlu1 %v150_v8, %s645_s17 }
  0x99   :  { %176 = vrot.lane.b32.xlu0 %v147_v61, %s646_s18  ;;  %178 = vrot.lane.b32.xlu1 %v148_v62, %s646_s18 }
  0x9d   :  { %180 = vrot.lane.b32.xlu0 %v149_v7, %s646_s18  ;;  %182 = vrot.lane.b32.xlu1 %v150_v8, %s646_s18 }
  0xa1   :  { %197 = vrot.lane.b32.xlu0 %v147_v61, %s647_s19  ;;  %199 = vrot.lane.b32.xlu1 %v148_v62, %s647_s19 }
  0xa5   :  { %201 = vrot.lane.b32.xlu0 %v149_v7, %s647_s19  ;;  %203 = vrot.lane.b32.xlu1 %v150_v8, %s647_s19 }
  0xa9   :  { %218 = vrot.lane.b32.xlu0 %v147_v61, %s648_s20  ;;  %220 = vrot.lane.b32.xlu1 %v148_v62, %s648_s20 }
  0xad   :  { %222 = vrot.lane.b32.xlu0 %v149_v7, %s648_s20  ;;  %224 = vrot.lane.b32.xlu1 %v150_v8, %s648_s20 }
 0x103   :  { %v158_v9 = vpop.permute.xlu1 %157  ;;  %v156_v10 = vpop.permute.xlu0 %155 }
 0x104   :  { %v170_v21 = vsel %vm163_vm12, %v158_v9, -inf  ;;  %v164_v22 = vsel %vm163_vm12, %v156_v10, %v158_v9 }
 0x105   :  { %v173_v25 = vmax.f32 %v148_v62, %v170_v21  ;;  %v172_v26 = vmax.f32 %v147_v61, %v164_v22 }
 0x107   :  { %v162_v11 = vpop.permute.xlu1 %161  ;;  %v160_v12 = vpop.permute.xlu0 %159 }
 0x108   :  { %v171_v29 = vsel %vm163_vm12, %v162_v11, -inf  ;;  %v165_v30 = vsel %vm163_vm12, %v160_v12, %v162_v11 }
 0x109   :  { %v175_v37 = vmax.f32 %v150_v8, %v171_v29  ;;  %v174_v38 = vmax.f32 %v149_v7, %v165_v30 }
 0x10b   :  { %v179_v15 = vpop.permute.xlu1 %178  ;;  %v177_v16 = vpop.permute.xlu0 %176 }
 0x10c   :  { %v185_v23 = vsel %vm184_vm13, %v177_v16, %v179_v15  ;;  %v191_v24 = vsel %vm184_vm13, -inf, %v177_v16 }
 0x10d   :  { %v193_v33 = vmax.f32 %v172_v26, %v191_v24  ;;  %v194_v34 = vmax.f32 %v173_v25, %v185_v23 }
 0x10f   :  { %v183_v17 = vpop.permute.xlu1 %182  ;;  %v181_v18 = vpop.permute.xlu0 %180 }
 0x110   :  { %v186_v35 = vsel %vm184_vm13, %v181_v18, %v183_v17  ;;  %v192_v36 = vsel %vm184_vm13, -inf, %v181_v18 }
 0x111   :  { %v195_v47 = vmax.f32 %v174_v38, %v192_v36  ;;  %v196_v48 = vmax.f32 %v175_v37, %v186_v35 }
 0x113   :  { %v200_v19 = vpop.permute.xlu1 %199  ;;  %v198_v20 = vpop.permute.xlu0 %197 }
 0x114   :  { %v212_v31 = vsel %vm205_vm14, %v200_v19, -inf  ;;  %v206_v32 = vsel %vm205_vm14, %v198_v20, %v200_v19 }
 0x115   :  { %v215_v39 = vmax.f32 %v194_v34, %v212_v31  ;;  %v214_v40 = vmax.f32 %v193_v33, %v206_v32 }
 0x117   :  { %v204_v27 = vpop.permute.xlu1 %203  ;;  %v202_v28 = vpop.permute.xlu0 %201 }
 0x118   :  { %v213_v43 = vsel %vm205_vm14, %v204_v27, -inf  ;;  %v207_v44 = vsel %vm205_vm14, %v202_v28, %v204_v27 }
 0x119   :  { %v217_v51 = vmax.f32 %v196_v48, %v213_v43  ;;  %v216_v52 = vmax.f32 %v195_v47, %v207_v44 }
 0x11b   :  { %v221_v41 = vpop.permute.xlu1 %220  ;;  %v219_v42 = vpop.permute.xlu0 %218 }
 0x11c   :  { %v227_v45 = vsel %vm226_vm15, %v219_v42, %v221_v41  ;;  %v233_v46 = vsel %vm226_vm15, -inf, %v219_v42 }
 0x11d   :  { %v805_v49 = vmax.f32 %v214_v40, %v233_v46  ;;  %v807_v50 = vmax.f32 %v215_v39, %v227_v45 }
 0x11f   :  { %607 = vst [vmem:[%s1100_s1] sm:$0xff] %v805_v49  ;;  %608 = vst [vmem:[%s1100_s1 + $0x8] sm:$0xff] %v807_v50  ;;  %v225_v53 = vpop.permute.xlu1 %224  ;;  %243 = vrot.lane.b32.xlu0 %v805_v49, %s641_s10  ;;  %245 = vrot.lane.b32.xlu1 %v807_v50, %s641_s10  ;;  %v223_v54 = vpop.permute.xlu0 %222 }
 0x120   :  { %v228_v55 = vsel %vm226_vm15, %v223_v54, %v225_v53  ;;  %v234_v56 = vsel %vm226_vm15, -inf, %v223_v54 }
 0x121   :  { %v823_v57 = vmax.f32 %v216_v52, %v234_v56  ;;  %v825_v58 = vmax.f32 %v217_v51, %v228_v55 }
 0x123   :  { %609 = vst [vmem:[%s1100_s1 + $0x10] sm:$0xff] %v823_v57  ;;  %610 = vst [vmem:[%s1100_s1 + $0x18] sm:$0xff] %v825_v58  ;;  %247 = vrot.lane.b32.xlu0 %v823_v57, %s641_s10  ;;  %249 = vrot.lane.b32.xlu1 %v825_v58, %s641_s10 }
 0x127   :  { %267 = vrot.lane.b32.xlu0 %v805_v49, %s642_s15  ;;  %269 = vrot.lane.b32.xlu1 %v807_v50, %s642_s15 }
 0x12b   :  { %271 = vrot.lane.b32.xlu0 %v823_v57, %s642_s15  ;;  %273 = vrot.lane.b32.xlu1 %v825_v58, %s642_s15 }
 0x12f   :  { %291 = vrot.lane.b32.xlu0 %v805_v49, %s643_s0  ;;  %293 = vrot.lane.b32.xlu1 %v807_v50, %s643_s0 }
 0x133   :  { %295 = vrot.lane.b32.xlu0 %v823_v57, %s643_s0  ;;  %297 = vrot.lane.b32.xlu1 %v825_v58, %s643_s0 }
 0x137   :  { %315 = vrot.lane.b32.xlu0 %v805_v49, %s644_s16  ;;  %317 = vrot.lane.b32.xlu1 %v807_v50, %s644_s16 }
 0x13b   :  { %319 = vrot.lane.b32.xlu0 %v823_v57, %s644_s16  ;;  %321 = vrot.lane.b32.xlu1 %v825_v58, %s644_s16 }
 0x191   :  { %v246_v59 = vpop.permute.xlu1 %245  ;;  %v244_v60 = vpop.permute.xlu0 %243 }
 0x192   :  { %v257_v3 = vsel %vm51_vm0, %v246_v59, -inf  ;;  %v251_v4 = vsel %vm51_vm0, %v244_v60, %v246_v59 }
 0x193   :  { %v260_v7 = vsel %vm61_vm3, %v257_v3, -inf  ;;  %v259_v8 = vsel %vm60_vm2, %v251_v4, -inf }
 0x194   :  { %v264_v17 = vmax.f32 %v807_v50, %v260_v7  ;;  %v263_v18 = vmax.f32 %v805_v49, %v259_v8 }
 0x195   :  { %v250_v61 = vpop.permute.xlu1 %249  ;;  %v248_v62 = vpop.permute.xlu0 %247 }
 0x196   :  { %v258_v11 = vsel %vm51_vm0, %v250_v61, -inf  ;;  %v252_v12 = vsel %vm51_vm0, %v248_v62, %v250_v61 }
 0x197   :  { %v262_v23 = vsel %vm61_vm3, %v258_v11, -inf  ;;  %v261_v24 = vsel %vm60_vm2, %v252_v12, -inf }
 0x198   :  { %v266_v33 = vmax.f32 %v825_v58, %v262_v23  ;;  %v265_v34 = vmax.f32 %v823_v57, %v261_v24 }
 0x199   :  { %v270_v63 = vpop.permute.xlu1 %269  ;;  %v268_v0 = vpop.permute.xlu0 %267 }
 0x19a   :  { %v275_v9 = vsel %vm78_vm1, %v268_v0, %v270_v63  ;;  %v281_v10 = vsel %vm78_vm1, -inf, %v268_v0 }
 0x19b   :  { %v283_v19 = vsel %vm87_vm4, %v281_v10, -inf  ;;  %v284_v20 = vsel %vm88_vm5, %v275_v9, -inf }
 0x19c   :  { %v287_v29 = vmax.f32 %v263_v18, %v283_v19  ;;  %v288_v30 = vmax.f32 %v264_v17, %v284_v20 }
 0x19d   :  { %v274_v1 = vpop.permute.xlu1 %273  ;;  %v272_v2 = vpop.permute.xlu0 %271 }
 0x19e   :  { %v276_v25 = vsel %vm78_vm1, %v272_v2, %v274_v1  ;;  %v282_v26 = vsel %vm78_vm1, -inf, %v272_v2 }
 0x19f   :  { %v285_v35 = vsel %vm87_vm4, %v282_v26, -inf  ;;  %v286_v36 = vsel %vm88_vm5, %v276_v25, -inf }
 0x1a0   :  { %v289_v47 = vmax.f32 %v265_v34, %v285_v35  ;;  %v290_v48 = vmax.f32 %v266_v33, %v286_v36 }
 0x1a1   :  { %v294_v5 = vpop.permute.xlu1 %293  ;;  %v292_v6 = vpop.permute.xlu0 %291 }
 0x1a2   :  { %v305_v15 = vsel %vm105_vm6, %v294_v5, -inf  ;;  %v299_v16 = vsel %vm105_vm6, %v292_v6, %v294_v5 }
 0x1a3   :  { %v308_v27 = vsel %vm115_vm8, %v305_v15, -inf  ;;  %v307_v28 = vsel %vm114_vm7, %v299_v16, -inf }
 0x1a4   :  { %v312_v39 = vmax.f32 %v288_v30, %v308_v27  ;;  %v311_v40 = vmax.f32 %v287_v29, %v307_v28 }
 0x1a5   :  { %v298_v21 = vpop.permute.xlu1 %297  ;;  %v296_v22 = vpop.permute.xlu0 %295 }
 0x1a6   :  { %v306_v31 = vsel %vm105_vm6, %v298_v21, -inf  ;;  %v300_v32 = vsel %vm105_vm6, %v296_v22, %v298_v21 }
 0x1a7   :  { %v310_v43 = vsel %vm115_vm8, %v306_v31, -inf  ;;  %v309_v44 = vsel %vm114_vm7, %v300_v32, -inf }
 0x1a8   :  { %v314_v53 = vmax.f32 %v290_v48, %v310_v43  ;;  %v313_v54 = vmax.f32 %v289_v47, %v309_v44 }
 0x1a9   :  { %v318_v37 = vpop.permute.xlu1 %317  ;;  %v316_v38 = vpop.permute.xlu0 %315 }
 0x1aa   :  { %v323_v41 = vsel %vm132_vm9, %v316_v38, %v318_v37  ;;  %v329_v42 = vsel %vm132_vm9, -inf, %v316_v38 }
 0x1ab   :  { %v331_v45 = vsel %vm141_vm10, %v329_v42, -inf  ;;  %v332_v46 = vsel %vm142_vm11, %v323_v41, -inf }
 0x1ac   :  { %v335_v49 = vmax.f32 %v311_v40, %v331_v45  ;;  %v336_v50 = vmax.f32 %v312_v39, %v332_v46 }
 0x1ad   :  { %v322_v51 = vpop.permute.xlu1 %321  ;;  %v320_v52 = vpop.permute.xlu0 %319 }
 0x1ae   :  { %v324_v55 = vsel %vm132_vm9, %v320_v52, %v322_v51  ;;  %v330_v56 = vsel %vm132_vm9, -inf, %v320_v52  ;;  %343 = vrot.lane.b32.xlu0 %v335_v49, %s645_s17  ;;  %345 = vrot.lane.b32.xlu1 %v336_v50, %s645_s17 }
 0x1af   :  { %v333_v57 = vsel %vm141_vm10, %v330_v56, -inf  ;;  %v334_v58 = vsel %vm142_vm11, %v324_v55, -inf }
 0x1b0   :  { %v337_v59 = vmax.f32 %v313_v54, %v333_v57  ;;  %v338_v60 = vmax.f32 %v314_v53, %v334_v58 }
 0x1b2   :  { %347 = vrot.lane.b32.xlu0 %v337_v59, %s645_s17  ;;  %349 = vrot.lane.b32.xlu1 %v338_v60, %s645_s17 }
 0x1b6   :  { %363 = vrot.lane.b32.xlu0 %v335_v49, %s646_s18  ;;  %365 = vrot.lane.b32.xlu1 %v336_v50, %s646_s18 }
 0x1ba   :  { %367 = vrot.lane.b32.xlu0 %v337_v59, %s646_s18  ;;  %369 = vrot.lane.b32.xlu1 %v338_v60, %s646_s18 }
 0x1be   :  { %383 = vrot.lane.b32.xlu0 %v335_v49, %s647_s19  ;;  %385 = vrot.lane.b32.xlu1 %v336_v50, %s647_s19 }
 0x1c2   :  { %387 = vrot.lane.b32.xlu0 %v337_v59, %s647_s19  ;;  %389 = vrot.lane.b32.xlu1 %v338_v60, %s647_s19 }
 0x1c6   :  { %403 = vrot.lane.b32.xlu0 %v335_v49, %s648_s20  ;;  %405 = vrot.lane.b32.xlu1 %v336_v50, %s648_s20 }
 0x1ca   :  { %407 = vrot.lane.b32.xlu0 %v337_v59, %s648_s20  ;;  %409 = vrot.lane.b32.xlu1 %v338_v60, %s648_s20 }
 0x220   :  { %v346_v61 = vpop.permute.xlu1 %345  ;;  %v344_v62 = vpop.permute.xlu0 %343 }
 0x221   :  { %v357_v7 = vsel %vm163_vm12, %v346_v61, -inf  ;;  %v351_v8 = vsel %vm163_vm12, %v344_v62, %v346_v61 }
 0x222   :  { %v360_v11 = vmax.f32 %v336_v50, %v357_v7  ;;  %v359_v12 = vmax.f32 %v335_v49, %v351_v8 }
 0x224   :  { %v350_v63 = vpop.permute.xlu1 %349  ;;  %v348_v0 = vpop.permute.xlu0 %347 }
 0x225   :  { %v358_v17 = vsel %vm163_vm12, %v350_v63, -inf  ;;  %v352_v18 = vsel %vm163_vm12, %v348_v0, %v350_v63 }
 0x226   :  { %v362_v25 = vmax.f32 %v338_v60, %v358_v17  ;;  %v361_v26 = vmax.f32 %v337_v59, %v352_v18 }
 0x228   :  { %v366_v1 = vpop.permute.xlu1 %365  ;;  %v364_v2 = vpop.permute.xlu0 %363 }
 0x229   :  { %v371_v9 = vsel %vm184_vm13, %v364_v2, %v366_v1  ;;  %v377_v10 = vsel %vm184_vm13, -inf, %v364_v2 }
 0x22a   :  { %v379_v21 = vmax.f32 %v359_v12, %v377_v10  ;;  %v380_v22 = vmax.f32 %v360_v11, %v371_v9 }
 0x22c   :  { %v370_v3 = vpop.permute.xlu1 %369  ;;  %v368_v4 = vpop.permute.xlu0 %367 }
 0x22d   :  { %v372_v23 = vsel %vm184_vm13, %v368_v4, %v370_v3  ;;  %v378_v24 = vsel %vm184_vm13, -inf, %v368_v4 }
 0x22e   :  { %v381_v35 = vmax.f32 %v361_v26, %v378_v24  ;;  %v382_v36 = vmax.f32 %v362_v25, %v372_v23 }
 0x230   :  { %v386_v5 = vpop.permute.xlu1 %385  ;;  %v384_v6 = vpop.permute.xlu0 %383 }
 0x231   :  { %v397_v19 = vsel %vm205_vm14, %v386_v5, -inf  ;;  %v391_v20 = vsel %vm205_vm14, %v384_v6, %v386_v5 }
 0x232   :  { %v400_v27 = vmax.f32 %v380_v22, %v397_v19  ;;  %v399_v28 = vmax.f32 %v379_v21, %v391_v20 }
 0x234   :  { %v390_v15 = vpop.permute.xlu1 %389  ;;  %v388_v16 = vpop.permute.xlu0 %387 }
 0x235   :  { %v398_v31 = vsel %vm205_vm14, %v390_v15, -inf  ;;  %v392_v32 = vsel %vm205_vm14, %v388_v16, %v390_v15 }
 0x236   :  { %v402_v39 = vmax.f32 %v382_v36, %v398_v31  ;;  %v401_v40 = vmax.f32 %v381_v35, %v392_v32 }
 0x238   :  { %v406_v29 = vpop.permute.xlu1 %405  ;;  %v404_v30 = vpop.permute.xlu0 %403 }
 0x239   :  { %v411_v33 = vsel %vm226_vm15, %v404_v30, %v406_v29  ;;  %v417_v34 = vsel %vm226_vm15, -inf, %v404_v30 }
 0x23a   :  { %v945_v37 = vmax.f32 %v399_v28, %v417_v34  ;;  %v947_v38 = vmax.f32 %v400_v27, %v411_v33 }
 0x23c   :  { %625 = vst [vmem:[%s1100_s1 + $0x20] sm:$0xff] %v945_v37  ;;  %626 = vst [vmem:[%s1100_s1 + $0x28] sm:$0xff] %v947_v38  ;;  %v410_v41 = vpop.permute.xlu1 %409  ;;  %427 = vrot.lane.b32.xlu0 %v945_v37, %s641_s10  ;;  %429 = vrot.lane.b32.xlu1 %v947_v38, %s641_s10  ;;  %v408_v42 = vpop.permute.xlu0 %407 }
 0x23d   :  { %v412_v43 = vsel %vm226_vm15, %v408_v42, %v410_v41  ;;  %v418_v44 = vsel %vm226_vm15, -inf, %v408_v42 }
 0x23e   :  { %v963_v45 = vmax.f32 %v401_v40, %v418_v44  ;;  %v965_v46 = vmax.f32 %v402_v39, %v412_v43 }
 0x240   :  { %627 = vst [vmem:[%s1100_s1 + $0x30] sm:$0xff] %v963_v45  ;;  %628 = vst [vmem:[%s1100_s1 + $0x38] sm:$0xff] %v965_v46  ;;  %431 = vrot.lane.b32.xlu0 %v963_v45, %s641_s10  ;;  %433 = vrot.lane.b32.xlu1 %v965_v46, %s641_s10 }
 0x244   :  { %451 = vrot.lane.b32.xlu0 %v945_v37, %s642_s15  ;;  %453 = vrot.lane.b32.xlu1 %v947_v38, %s642_s15 }
 0x248   :  { %455 = vrot.lane.b32.xlu0 %v963_v45, %s642_s15  ;;  %457 = vrot.lane.b32.xlu1 %v965_v46, %s642_s15 }
 0x24c   :  { %475 = vrot.lane.b32.xlu0 %v945_v37, %s643_s0  ;;  %477 = vrot.lane.b32.xlu1 %v947_v38, %s643_s0 }
 0x250   :  { %479 = vrot.lane.b32.xlu0 %v963_v45, %s643_s0  ;;  %481 = vrot.lane.b32.xlu1 %v965_v46, %s643_s0 }
 0x254   :  { %499 = vrot.lane.b32.xlu0 %v945_v37, %s644_s16  ;;  %501 = vrot.lane.b32.xlu1 %v947_v38, %s644_s16 }
 0x258   :  { %503 = vrot.lane.b32.xlu0 %v963_v45, %s644_s16  ;;  %505 = vrot.lane.b32.xlu1 %v965_v46, %s644_s16 }
 0x2ae   :  { %v430_v47 = vpop.permute.xlu1 %429  ;;  %v428_v48 = vpop.permute.xlu0 %427 }
 0x2af   :  { %v441_v55 = vsel %vm51_vm0, %v430_v47, -inf  ;;  %v435_v56 = vsel %vm51_vm0, %v428_v48, %v430_v47 }
 0x2b0   :  { %v444_v59 = vsel %vm61_vm3, %v441_v55, -inf  ;;  %v443_v60 = vsel %vm60_vm2, %v435_v56, -inf }
 0x2b1   :  { %v448_v3 = vmax.f32 %v947_v38, %v444_v59  ;;  %v447_v4 = vmax.f32 %v945_v37, %v443_v60 }
 0x2b2   :  { %v434_v49 = vpop.permute.xlu1 %433  ;;  %v432_v50 = vpop.permute.xlu0 %431 }
 0x2b3   :  { %v442_v63 = vsel %vm51_vm0, %v434_v49, -inf  ;;  %v436_v0 = vsel %vm51_vm0, %v432_v50, %v434_v49 }
 0x2b4   :  { %v446_v9 = vsel %vm61_vm3, %v442_v63, -inf  ;;  %v445_v10 = vsel %vm60_vm2, %v436_v0, -inf }
 0x2b5   :  { %v450_v21 = vmax.f32 %v965_v46, %v446_v9  ;;  %v449_v22 = vmax.f32 %v963_v45, %v445_v10 }
 0x2b6   :  { %v454_v51 = vpop.permute.xlu1 %453  ;;  %v452_v52 = vpop.permute.xlu0 %451 }
 0x2b7   :  { %v459_v61 = vsel %vm78_vm1, %v452_v52, %v454_v51  ;;  %v465_v62 = vsel %vm78_vm1, -inf, %v452_v52 }
 0x2b8   :  { %v467_v5 = vsel %vm87_vm4, %v465_v62, -inf  ;;  %v468_v6 = vsel %vm88_vm5, %v459_v61, -inf }
 0x2b9   :  { %v471_v17 = vmax.f32 %v447_v4, %v467_v5  ;;  %v472_v18 = vmax.f32 %v448_v3, %v468_v6 }
 0x2ba   :  { %v458_v53 = vpop.permute.xlu1 %457  ;;  %v456_v54 = vpop.permute.xlu0 %455 }
 0x2bb   :  { %v460_v11 = vsel %vm78_vm1, %v456_v54, %v458_v53  ;;  %v466_v12 = vsel %vm78_vm1, -inf, %v456_v54 }
 0x2bc   :  { %v469_v23 = vsel %vm87_vm4, %v466_v12, -inf  ;;  %v470_v24 = vsel %vm88_vm5, %v460_v11, -inf }
 0x2bd   :  { %v473_v35 = vmax.f32 %v449_v22, %v469_v23  ;;  %v474_v36 = vmax.f32 %v450_v21, %v470_v24 }
 0x2be   :  { %v478_v57 = vpop.permute.xlu1 %477  ;;  %v476_v58 = vpop.permute.xlu0 %475 }
 0x2bf   :  { %v489_v1 = vsel %vm105_vm6, %v478_v57, -inf  ;;  %v483_v2 = vsel %vm105_vm6, %v476_v58, %v478_v57 }
 0x2c0   :  { %v492_v15 = vsel %vm115_vm8, %v489_v1, -inf  ;;  %v491_v16 = vsel %vm114_vm7, %v483_v2, -inf }
 0x2c1   :  { %v496_v27 = vmax.f32 %v472_v18, %v492_v15  ;;  %v495_v28 = vmax.f32 %v471_v17, %v491_v16 }
 0x2c2   :  { %v482_v7 = vpop.permute.xlu1 %481  ;;  %v480_v8 = vpop.permute.xlu0 %479 }
 0x2c3   :  { %v490_v19 = vsel %vm105_vm6, %v482_v7, -inf  ;;  %v484_v20 = vsel %vm105_vm6, %v480_v8, %v482_v7 }
 0x2c4   :  { %v494_v31 = vsel %vm115_vm8, %v490_v19, -inf  ;;  %v493_v32 = vsel %vm114_vm7, %v484_v20, -inf }
 0x2c5   :  { %v498_v41 = vmax.f32 %v474_v36, %v494_v31  ;;  %v497_v42 = vmax.f32 %v473_v35, %v493_v32 }
 0x2c6   :  { %v502_v25 = vpop.permute.xlu1 %501  ;;  %v500_v26 = vpop.permute.xlu0 %499 }
 0x2c7   :  { %v507_v29 = vsel %vm132_vm9, %v500_v26, %v502_v25  ;;  %v513_v30 = vsel %vm132_vm9, -inf, %v500_v26 }
 0x2c8   :  { %v515_v33 = vsel %vm141_vm10, %v513_v30, -inf  ;;  %v516_v34 = vsel %vm142_vm11, %v507_v29, -inf }
 0x2c9   :  { %v519_v37 = vmax.f32 %v495_v28, %v515_v33  ;;  %v520_v38 = vmax.f32 %v496_v27, %v516_v34 }
 0x2ca   :  { %v506_v39 = vpop.permute.xlu1 %505  ;;  %v504_v40 = vpop.permute.xlu0 %503 }
 0x2cb   :  { %v508_v43 = vsel %vm132_vm9, %v504_v40, %v506_v39  ;;  %v514_v44 = vsel %vm132_vm9, -inf, %v504_v40  ;;  %527 = vrot.lane.b32.xlu0 %v519_v37, %s645_s17  ;;  %529 = vrot.lane.b32.xlu1 %v520_v38, %s645_s17 }
 0x2cc   :  { %v517_v45 = vsel %vm141_vm10, %v514_v44, -inf  ;;  %v518_v46 = vsel %vm142_vm11, %v508_v43, -inf }
 0x2cd   :  { %v521_v47 = vmax.f32 %v497_v42, %v517_v45  ;;  %v522_v48 = vmax.f32 %v498_v41, %v518_v46 }
 0x2cf   :  { %531 = vrot.lane.b32.xlu0 %v521_v47, %s645_s17  ;;  %533 = vrot.lane.b32.xlu1 %v522_v48, %s645_s17 }
 0x2d3   :  { %547 = vrot.lane.b32.xlu0 %v519_v37, %s646_s18  ;;  %549 = vrot.lane.b32.xlu1 %v520_v38, %s646_s18 }
 0x2d7   :  { %551 = vrot.lane.b32.xlu0 %v521_v47, %s646_s18  ;;  %553 = vrot.lane.b32.xlu1 %v522_v48, %s646_s18 }
 0x2db   :  { %567 = vrot.lane.b32.xlu0 %v519_v37, %s647_s19  ;;  %569 = vrot.lane.b32.xlu1 %v520_v38, %s647_s19 }
 0x2df   :  { %571 = vrot.lane.b32.xlu0 %v521_v47, %s647_s19  ;;  %573 = vrot.lane.b32.xlu1 %v522_v48, %s647_s19 }
 0x2e3   :  { %587 = vrot.lane.b32.xlu0 %v519_v37, %s648_s20  ;;  %589 = vrot.lane.b32.xlu1 %v520_v38, %s648_s20 }
 0x2e7   :  { %591 = vrot.lane.b32.xlu0 %v521_v47, %s648_s20  ;;  %593 = vrot.lane.b32.xlu1 %v522_v48, %s648_s20 }
 0x33d   :  { %v530_v13 = vpop.permute.xlu1 %529  ;;  %v528_v14 = vpop.permute.xlu0 %527 }
 0x33e   :  { %v541_v57 = vsel %vm163_vm12, %v530_v13, -inf  ;;  %v535_v58 = vsel %vm163_vm12, %v528_v14, %v530_v13 }
 0x33f   :  { %v544_v61 = vmax.f32 %v520_v38, %v541_v57  ;;  %v543_v62 = vmax.f32 %v519_v37, %v535_v58 }
 0x341   :  { %v534_v49 = vpop.permute.xlu1 %533  ;;  %v532_v50 = vpop.permute.xlu0 %531 }
 0x342   :  { %v542_v1 = vsel %vm163_vm12, %v534_v49, -inf  ;;  %v536_v2 = vsel %vm163_vm12, %v532_v50, %v534_v49 }
 0x343   :  { %v546_v9 = vmax.f32 %v522_v48, %v542_v1  ;;  %v545_v10 = vmax.f32 %v521_v47, %v536_v2 }
 0x345   :  { %v550_v51 = vpop.permute.xlu1 %549  ;;  %v548_v52 = vpop.permute.xlu0 %547 }
 0x346   :  { %v555_v59 = vsel %vm184_vm13, %v548_v52, %v550_v51  ;;  %v561_v60 = vsel %vm184_vm13, -inf, %v548_v52 }
 0x347   :  { %v563_v5 = vmax.f32 %v543_v62, %v561_v60  ;;  %v564_v6 = vmax.f32 %v544_v61, %v555_v59 }
 0x349   :  { %v554_v53 = vpop.permute.xlu1 %553  ;;  %v552_v54 = vpop.permute.xlu0 %551 }
 0x34a   :  { %v556_v7 = vsel %vm184_vm13, %v552_v54, %v554_v53  ;;  %v562_v8 = vsel %vm184_vm13, -inf, %v552_v54 }
 0x34b   :  { %v565_v21 = vmax.f32 %v545_v10, %v562_v8  ;;  %v566_v22 = vmax.f32 %v546_v9, %v556_v7 }
 0x34d   :  { %v570_v55 = vpop.permute.xlu1 %569  ;;  %v568_v56 = vpop.permute.xlu0 %567 }
 0x34e   :  { %v581_v3 = vsel %vm205_vm14, %v570_v55, -inf  ;;  %v575_v4 = vsel %vm205_vm14, %v568_v56, %v570_v55 }
 0x34f   :  { %v584_v11 = vmax.f32 %v564_v6, %v581_v3  ;;  %v583_v12 = vmax.f32 %v563_v5, %v575_v4 }
 0x351   :  { %v574_v63 = vpop.permute.xlu1 %573  ;;  %v572_v0 = vpop.permute.xlu0 %571 }
 0x352   :  { %v582_v17 = vsel %vm205_vm14, %v574_v63, -inf  ;;  %v576_v18 = vsel %vm205_vm14, %v572_v0, %v574_v63 }
 0x353   :  { %v586_v25 = vmax.f32 %v566_v22, %v582_v17  ;;  %v585_v26 = vmax.f32 %v565_v21, %v576_v18 }
 0x355   :  { %v590_v15 = vpop.permute.xlu1 %589  ;;  %v588_v16 = vpop.permute.xlu0 %587 }
 0x356   :  { %v595_v19 = vsel %vm226_vm15, %v588_v16, %v590_v15  ;;  %v601_v20 = vsel %vm226_vm15, -inf, %v588_v16 }
 0x357   :  { %v603_v23 = vmax.f32 %v583_v12, %v601_v20  ;;  %v604_v24 = vmax.f32 %v584_v11, %v595_v19 }
 0x359   :  { %629 = vst [vmem:[%s1100_s1 + $0x40] sm:$0xff] %v603_v23  ;;  %630 = vst [vmem:[%s1100_s1 + $0x48] sm:$0xff] %v604_v24  ;;  %v594_v27 = vpop.permute.xlu1 %593  ;;  %v592_v28 = vpop.permute.xlu0 %591 }
 0x35a   :  { %v596_v29 = vsel %vm226_vm15, %v592_v28, %v594_v27  ;;  %v602_v30 = vsel %vm226_vm15, -inf, %v592_v28 }
 0x35b   :  { %v605_v31 = vmax.f32 %v585_v26, %v602_v30  ;;  %v606_v32 = vmax.f32 %v586_v25, %v596_v29 }
 0x35d   :  { %631 = vst [vmem:[%s1100_s1 + $0x50] sm:$0xff] %v605_v31  ;;  %632 = vst [vmem:[%s1100_s1 + $0x58] sm:$0xff] %v606_v32 }

// kernel: spp_forward.8
= control target key start
LH: loop header
LB: loop body
LE: loop exit
PB: predicated region body
PF: predicated region fallthrough
CT: control target
= control target key end

     0   :  { %s658_s15 = smov 0   ;;  %s660_s16 = smov 0   ;;  %s743_s0 = inlined_call_operand.vmem [shape: f32[2,8,256], index: 0, kind: input, shape index: {}]   ;;  %s744_s1 = inlined_call_operand.vmem [shape: f32[3,2,8,256], index: 1, kind: input, shape index: {}]   ;;  %s745_s2 = inlined_call_operand.vmem [shape: f32[16,32], index: 2, kind: input, shape index: {}]   ;;  %s746_s3 = inlined_call_operand.vmem [shape: f32[16,1], index: 3, kind: input, shape index: {}]   ;;  %s747_s4 = inlined_call_operand.vmem [shape: f32[2,16,256], index: 4, kind: output, shape index: {}]  }
   0x1   :  { %s662_s17 = smov 0   ;;  %s664_s18 = smov 0  }
   0x2   :  { %s666_s19 = smov 0  }
   0x3 LB: > { %s26_s20 = sadd.s32 1, %s625_s18  ;;  %p70_p1 = scmp.ne.s32.totalorder %s617_s16, %s613_s15  ;;  %s629_s19 = sphi %s666_s19, %s14_s19   ;;  %s625_s18 = sphi %s664_s18, %s751_s18   ;;  %s621_s17 = sphi %s662_s17, %s750_s17   ;;  %s617_s16 = sphi %s660_s16, %s749_s16   ;;  %s613_s15 = sphi %s658_s15, %s748_s15  }
   0x4   : > { %p28_p0 = scmp.ge.s32.totalorder %s26_s20, 2  ;;  %p71_p2 = scmp.eq.s32.totalorder %s629_s19, 0 }
   0x5   : > { %s63_s22 = sadd.s32 1, %s617_s16  ;;  %p515_p5 = scmp.ge.s32.totalorder %s629_s19, 2 }
   0x6   : > { %s753_s20 = smov (%p28_p0, %s26_s20), 0  ;;  %p72_p3 = por %p71_p2, %p70_p1 }
   0x7   : > { %s58_s21 = ssub.s32 %s625_s18, %s753_s20  ;;  %172 = sbr.rel (%p515_p5) target bundleno = 21 (0x15), region = 24 }
   0x8   : > { %p61_p4 = scmp.eq.s32.totalorder %s58_s21, 0 }
   0xa   : > { %s693_s23 = scalar_select %p61_p4, %s617_s16, %s63_s22  }
   0xe   : > { %188 = sbr.rel (!%p72_p3) target bundleno = 21 (0x15), region = 32  ;;  %s190_s24 = sand.u32 (%p72_p3), 1, %s617_s16  }
   0xf   : > { %s531_s25 = sshll.u32 (%p72_p3), %s625_s18, 4  ;;  %s546_s26 = smul.u32 (%p72_p3), 48, %s190_s24 }
  0x10   : > { %s197_s29 = scalar_lea.vmem (%p72_p3), %s744_s1, %s531_s25 }
  0x11   : > { %v210_v0 = vld [vmem:[%s197_s29] sm:$0xff] (%p72_p3)  ;;  %v212_v1 = vld [vmem:[%s197_s29 + $0x8] sm:$0xff] (%p72_p3)  ;;  %s192_s30 = scalar_lea.vmem (%p72_p3), [#allocation2], %s546_s26 }
  0x12   : > { %v214_v2 = vld [vmem:[%s197_s29 + $0x20] sm:$0xff] (%p72_p3)  ;;  %v216_v3 = vld [vmem:[%s197_s29 + $0x28] sm:$0xff] (%p72_p3)  ;;  %211 = vst [vmem:[%s192_s30] sm:$0xff] (%p72_p3), %v210_v0  ;;  %213 = vst [vmem:[%s192_s30 + $0x8] sm:$0xff] (%p72_p3), %v212_v1 }
  0x13   : > { %v218_v4 = vld [vmem:[%s197_s29 + $0x40] sm:$0xff] (%p72_p3)  ;;  %v220_v5 = vld [vmem:[%s197_s29 + $0x48] sm:$0xff] (%p72_p3)  ;;  %215 = vst [vmem:[%s192_s30 + $0x10] sm:$0xff] (%p72_p3), %v214_v2  ;;  %217 = vst [vmem:[%s192_s30 + $0x18] sm:$0xff] (%p72_p3), %v216_v3 }
  0x14   : > { %219 = vst [vmem:[%s192_s30 + $0x20] sm:$0xff] (%p72_p3), %v218_v4  ;;  %221 = vst [vmem:[%s192_s30 + $0x28] sm:$0xff] (%p72_p3), %v220_v5 }
  0x15 PF: > { %p518_p6 = scmp.ge.s32.totalorder %s629_s19, 1  ;;  %p226_p7 = scmp.lt.s32.totalorder %s629_s19, 3 }
  0x17   : > { %p227_p8 = pnand %p518_p6, %p226_p7 }
  0x18   : > { %s233_s5 = sand.u32 (!%p227_p8), 1, %s613_s15   ;;  %p272_p9 = scmp.lt.s32.totalorder (!%p227_p8), %s621_s17, 1  ;;  %v631_v6 = vmov (!%p227_p8), 0.0   ;;  %v304_v7 = vld [vmem:[%s746_s3] sm:$0xff] (!%p227_p8)  ;;  %v632_v8 = vmov (!%p227_p8), 0   ;;  %v305_v9 = vld [vmem:[%s746_s3 + $0x8] sm:$0xff] (!%p227_p8) }
  0x19   : > { %230 = sbr.rel (%p227_p8) target bundleno = 262 (0x106), region = 55  ;;  %387 = vmatprep.mubr.f32.mxu0 (!%p227_p8), %v631_v6  ;;  %393 = vmatprep.mubr.f32.mxu1 (!%p227_p8), %v631_v6  ;;  %v302_v22 = vld [vmem:[%s745_s2] sm:$0xff] (!%p227_p8)  ;;  %vm316_vm0 = vcmask (!%p227_p8), 261120   ;;  %v303_v23 = vld [vmem:[%s745_s2 + $0x8] sm:$0xff] (!%p227_p8) }
  0x1a   : > { %s547_s6 = smul.u32 (!%p227_p8), 48, %s233_s5  ;;  %590 = vset.pattern.permute.xlu0 (!%p227_p8), %v632_v8 }
  0x1b   : > { %308 = vperm.xlu0 (!%p227_p8), %590, %v304_v7  }
  0x1c   : > { %s235_s12 = scalar_lea.vmem (!%p227_p8), [#allocation2], %s547_s6 }
  0x1d   : > { %v295_v10 = vld [vmem:[%s235_s12 + $0x8] sm:$0xff] (!%p227_p8)  ;;  %v294_v11 = vld [vmem:[%s235_s12] sm:$0xff] (!%p227_p8)  ;;  %v524_v12 = vld [vmem:[%s235_s12 + $0x18] sm:$0xff] (!%p227_p8) }
  0x1e   : > { %v526_v13 = vld [vmem:[%s235_s12 + $0x28] sm:$0xff] (!%p227_p8)  ;;  %v523_v19 = vld [vmem:[%s235_s12 + $0x10] sm:$0xff] (!%p227_p8)  ;;  %v525_v20 = vld [vmem:[%s235_s12 + $0x20] sm:$0xff] (!%p227_p8) }
  0x1f   : > { %v538_v18 = vpack.c.bf16 (!%p227_p8), %v526_v13, %v524_v12  ;;  %313 = vperm.xlu0 (!%p227_p8), %590, %v305_v9   ;;  %v540_v21 = vpack.c.bf16 (!%p227_p8), %v525_v20, %v523_v19 }
  0x20   : > { %s755_s17 = smov (!%p272_p9, %s621_s17), 1 }
  0x21   : > { %s532_s11 = sshll.u32 %s755_s17, 4  ;;  %s533_s26 = sshll.u32 %s755_s17, 5 }
  0x22   : > { %s279_s15 = scalar_lea.vmem %s743_s0, %s532_s11  ;;  %s290_s29 = scalar_lea.vmem %s747_s4, %s533_s26 }
  0x23   : > { %v293_v14 = vld [vmem:[%s279_s15 + $0x8] sm:$0xff]  ;;  %v292_v15 = vld [vmem:[%s279_s15] sm:$0xff] }
  0x24   : > { %v534_v16 = vpack.c.bf16 %v295_v10, %v293_v14  ;;  %v536_v17 = vpack.c.bf16 %v294_v11, %v292_v15 }
  0x26   : > { %535 = vmatprep.subr.bf16.mxu0 %v534_v16  ;;  %542 = vmatprep.subr.bf16.mxu1 %v534_v16 }
  0x27   : > { %537 = vmatpush1.bf16.msra.mxu0 %v536_v17  ;;  %544 = vmatpush1.bf16.msra.mxu1 %v536_v17 }
  0x28   : > { %539 = vmatprep.subr.bf16.mxu0 %v538_v18  ;;  %543 = vmatprep.subr.bf16.mxu1 %v538_v18 }
  0x2b   : > { %541 = vmatpush1.bf16.msra.mxu0 %v540_v21  ;;  %545 = vmatpush1.bf16.msra.mxu1 %v540_v21 }
  0x2e   : > { %527 = vmatmul.mubr.msk.f32.vlgmr.msra.gmra.mrb[0].mxu0 %vm316_vm0, %v302_v22  ;;  %528 = vmatmul.mubr.msk.f32.vlgmr.msra.gmra.mrb[0].mxu1 %vm316_vm0, %v303_v23 }
  0x9a   : > { %v309_v24 = vpop.permute.xlu0 %308 }
  0x9e   : > { %v314_v25 = vpop.permute.xlu0 %313 }
 0x101   : > { %v389_v26 = vpop.f32.mrb[0].mxu0  ;;  %v395_v27 = vpop.f32.mrb[0].mxu1 }
 0x102   : > { %v390_v28 = vadd.f32 %v389_v26, %v309_v24  ;;  %v396_v29 = vadd.f32 %v395_v27, %v314_v25  ;;  %v391_v30 = vpop.f32.mrb[1].mxu0  ;;  %v397_v31 = vpop.f32.mrb[1].mxu1 }
 0x103   : > { %v392_v32 = vadd.f32 %v391_v30, %v309_v24  ;;  %v398_v33 = vadd.f32 %v397_v31, %v314_v25 }
 0x104   : > { %400 = vst [vmem:[%s290_s29] sm:$0xff] %v390_v28  ;;  %402 = vst [vmem:[%s290_s29 + $0x10] sm:$0xff] %v396_v29 }
 0x105   : > { %401 = vst [vmem:[%s290_s29 + $0x8] sm:$0xff] %v392_v32  ;;  %403 = vst [vmem:[%s290_s29 + $0x18] sm:$0xff] %v398_v33 }
 0x106 PF: > { %s14_s19 = sadd.s32 1, %s629_s19   ;;  %s748_s15 = smov %s617_s16 }
 0x107   : > { %p11_p10 = scmp.ge.s32.totalorder %s14_s19, 4   ;;  %s749_s16 = smov %s693_s23 }
 0x108   : > { %s750_s17 = smov %s625_s18  ;;  %s751_s18 = smov %s753_s20 }
 0x109   :  { %13 = sbr.rel (!%p11_p10) target bundleno = 3 (0x3), region = 99 }

// kernel: spp_forward.9
= control target key start
LH: loop header
LB: loop body
LE: loop exit
PB: predicated region body
PF: predicated region fallthrough
CT: control target
= control target key end

     0   :  { %s915_s12 = smov 0   ;;  %s917_s13 = smov 0   ;;  %s1208_s0 = inlined_call_operand.vmem [shape: f32[2,16,256], index: 0, kind: input, shape index: {}]   ;;  %s1209_s1 = inlined_call_operand.vmem [shape: f32[9,16,1], index: 1, kind: input, shape index: {}]   ;;  %s1210_s2 = inlined_call_operand.vmem [shape: f32[16,1], index: 2, kind: input, shape index: {}]   ;;  %s1211_s3 = inlined_call_operand.vmem [shape: f32[2,16,256], index: 3, kind: output, shape index: {}]  }
   0x1   :  { %s919_s14 = smov 0  }
   0x2 LB: > { %s25_s15 = sadd.s32 1, %s880_s13  ;;  %p802_p0 = scmp.ge.s32.totalorder %s884_s14, 1  ;;  %s884_s14 = sphi %s919_s14, %s13_s14   ;;  %s880_s13 = sphi %s917_s13, %s1221_s13   ;;  %s876_s12 = sphi %s915_s12, %s1220_s12  }
   0x3   : > { %p27_p1 = scmp.ge.s32.totalorder %s25_s15, 2  ;;  %p181_p2 = scmp.lt.s32.totalorder %s884_s14, 3 }
   0x5   : > { %s1223_s15 = smov (%p27_p1, %s25_s15), 0  ;;  %p182_p3 = pnand %p802_p0, %p181_p2 }
   0x6   : > { %p226_p4 = scmp.lt.s32.totalorder (!%p182_p3), %s876_s12, 1  ;;  %v886_v0 = vmov (!%p182_p3), 0   ;;  %s887_s20 = smov (!%p182_p3), 17   ;;  %v318_v5 = vld [vmem:[%s1209_s1 + $0x8] sm:$0xff] (!%p182_p3)  ;;  %v317_v6 = vld [vmem:[%s1209_s1] sm:$0xff] (!%p182_p3)  ;;  %v807_v7 = vld [vmem:[%s1209_s1 + $0x10] sm:$0xff] (!%p182_p3)  ;;  %v263_v29 = vlaneseq (!%p182_p3) }
   0x7   : > { %185 = sbr.rel (%p182_p3) target bundleno = 257 (0x101), region = 32  ;;  %861 = vset.pattern.permute.xlu1 (!%p182_p3), %v886_v0  ;;  %860 = vset.pattern.permute.xlu0 (!%p182_p3), %v886_v0  ;;  %s888_s25 = smov (!%p182_p3), 16   ;;  %v808_v8 = vld [vmem:[%s1209_s1 + $0x18] sm:$0xff] (!%p182_p3)  ;;  %v809_v9 = vld [vmem:[%s1209_s1 + $0x20] sm:$0xff] (!%p182_p3)  ;;  %v810_v10 = vld [vmem:[%s1209_s1 + $0x28] sm:$0xff] (!%p182_p3)  ;;  %vm302_vm0 = vcmask (!%p182_p3), 138240  }
   0x8   : > { %s889_s30 = smov (!%p182_p3), 15   ;;  %s890_s8 = smov (!%p182_p3), 1   ;;  %v811_v11 = vld [vmem:[%s1209_s1 + $0x30] sm:$0xff] (!%p182_p3)  ;;  %v812_v12 = vld [vmem:[%s1209_s1 + $0x38] sm:$0xff] (!%p182_p3)  ;;  %v813_v13 = vld [vmem:[%s1209_s1 + $0x40] sm:$0xff] (!%p182_p3)  ;;  %v1041_v32 = vand.u32 (!%p182_p3), 127, %v263_v29 }
   0x9   : > { %v814_v14 = vld [vmem:[%s1209_s1 + $0x48] sm:$0xff] (!%p182_p3)  ;;  %v815_v15 = vld [vmem:[%s1209_s1 + $0x50] sm:$0xff] (!%p182_p3)  ;;  %v816_v16 = vld [vmem:[%s1209_s1 + $0x58] sm:$0xff] (!%p182_p3)  ;;  %s891_s7 = smov (!%p182_p3), 127   ;;  %s892_s17 = smov (!%p182_p3), 113   ;;  %vm345_vm3 = vcmask (!%p182_p3), 130048  }
   0xa   : > { %v817_v17 = vld [vmem:[%s1209_s1 + $0x60] sm:$0xff] (!%p182_p3)  ;;  %v818_v18 = vld [vmem:[%s1209_s1 + $0x68] sm:$0xff] (!%p182_p3)  ;;  %v819_v19 = vld [vmem:[%s1209_s1 + $0x70] sm:$0xff] (!%p182_p3)  ;;  %s893_s18 = smov (!%p182_p3), 112   ;;  %s894_s23 = smov (!%p182_p3), 111   ;;  %v1044_v33 = vadd.s32 (!%p182_p3), 128, %v1041_v32 }
   0xb   : > { %v820_v20 = vld [vmem:[%s1209_s1 + $0x78] sm:$0xff] (!%p182_p3)  ;;  %v821_v21 = vld [vmem:[%s1209_s1 + $0x80] sm:$0xff] (!%p182_p3)  ;;  %v822_v22 = vld [vmem:[%s1209_s1 + $0x88] sm:$0xff] (!%p182_p3)  ;;  %v270_v34 = vand.u32 (!%p182_p3), 15, %v1041_v32  ;;  %vm383_vm4 = vcmask (!%p182_p3), 121856   ;;  %vm427_vm7 = vcmask (!%p182_p3), 7168  }
   0xc   : > { %v646_v23 = vld [vmem:[%s1210_s2] sm:$0xff] (!%p182_p3)  ;;  %v647_v24 = vld [vmem:[%s1210_s2 + $0x8] sm:$0xff] (!%p182_p3)  ;;  %v277_v35 = vand.u32 (!%p182_p3), 15, %v1044_v33  ;;  %vm490_vm8 = vcmask (!%p182_p3), 1039360   ;;  %vm532_vm9 = vcmask (!%p182_p3), 924672   ;;  %vm574_vm10 = vcmask (!%p182_p3), 916480  }
   0xd   : > { %vm1050_vm1 = vcmp.ge.s32.totalorder (!%p182_p3), %v270_v34, 1  ;;  %vm1094_vm5 = vcmp.lt.s32.totalorder (!%p182_p3), %v270_v34, 15  ;;  %vm612_vm11 = vcmask (!%p182_p3), 908288  }
   0xe   : > { %s1225_s12 = smov (!%p226_p4, %s876_s12), 1  ;;  %vm1056_vm2 = vcmp.ge.s32.totalorder %v277_v35, 1  ;;  %vm1100_vm6 = vcmp.lt.s32.totalorder %v277_v35, 15 }
   0xf   : > { %s825_s16 = sshll.u32 %s1225_s12, 5 }
  0x10   : > { %s234_s19 = scalar_lea.vmem %s1208_s0, %s825_s16  ;;  %s257_s26 = scalar_lea.vmem %s1211_s3, %s825_s16 }
  0x11   : > { %v941_v1 = vld [vmem:[%s234_s19 + $0x10] sm:$0xff]  ;;  %v943_v2 = vld [vmem:[%s234_s19] sm:$0xff]  ;;  %v947_v3 = vld [vmem:[%s234_s19 + $0x18] sm:$0xff] }
  0x12   : > { %298 = vrot.lane.b32.xlu1 %v941_v1, %s887_s20  ;;  %294 = vrot.lane.b32.xlu0 %v943_v2, %s887_s20  ;;  %v949_v4 = vld [vmem:[%s234_s19 + $0x8] sm:$0xff] }
  0x16   : > { %300 = vrot.lane.b32.xlu1 %v947_v3, %s887_s20  ;;  %296 = vrot.lane.b32.xlu0 %v949_v4, %s887_s20 }
  0x1a   : > { %326 = vperm.xlu1 %861, %v318_v5   ;;  %321 = vperm.xlu0 %860, %v317_v6  }
  0x1e   : > { %337 = vrot.lane.b32.xlu1 %v943_v2, %s888_s25  ;;  %339 = vrot.lane.b32.xlu0 %v949_v4, %s888_s25 }
  0x22   : > { %341 = vrot.lane.b32.xlu1 %v941_v1, %s888_s25  ;;  %343 = vrot.lane.b32.xlu0 %v947_v3, %s888_s25 }
  0x26   : > { %359 = vperm.xlu1 %861, %v807_v7   ;;  %364 = vperm.xlu0 %860, %v808_v8  }
  0x2a   : > { %375 = vrot.lane.b32.xlu1 %v943_v2, %s889_s30  ;;  %377 = vrot.lane.b32.xlu0 %v949_v4, %s889_s30 }
  0x2e   : > { %379 = vrot.lane.b32.xlu1 %v941_v1, %s889_s30  ;;  %381 = vrot.lane.b32.xlu0 %v947_v3, %s889_s30 }
  0x32   : > { %403 = vperm.xlu1 %861, %v809_v9   ;;  %408 = vperm.xlu0 %860, %v810_v10  }
  0x36   : > { %419 = vrot.lane.b32.xlu1 %v943_v2, %s890_s8  ;;  %421 = vrot.lane.b32.xlu0 %v949_v4, %s890_s8 }
  0x3a   : > { %423 = vrot.lane.b32.xlu1 %v941_v1, %s890_s8  ;;  %425 = vrot.lane.b32.xlu0 %v947_v3, %s890_s8 }
  0x3e   : > { %445 = vperm.xlu1 %861, %v811_v11   ;;  %450 = vperm.xlu0 %860, %v812_v12  }
  0x42   : > { %466 = vperm.xlu1 %861, %v813_v13   ;;  %471 = vperm.xlu0 %860, %v814_v14  }
  0x46   : > { %508 = vperm.xlu1 %861, %v815_v15   ;;  %513 = vperm.xlu0 %860, %v816_v16  }
  0x4a   : > { %550 = vperm.xlu1 %861, %v817_v17   ;;  %555 = vperm.xlu0 %860, %v818_v18  }
  0x4e   : > { %588 = vperm.xlu1 %861, %v819_v19   ;;  %593 = vperm.xlu0 %860, %v820_v20  }
  0x52   : > { %482 = vrot.lane.b32.xlu1 %v943_v2, %s891_s7  ;;  %484 = vrot.lane.b32.xlu0 %v949_v4, %s891_s7 }
  0x56   : > { %486 = vrot.lane.b32.xlu1 %v941_v1, %s891_s7  ;;  %488 = vrot.lane.b32.xlu0 %v947_v3, %s891_s7 }
  0x5a   : > { %630 = vperm.xlu1 %861, %v821_v21   ;;  %635 = vperm.xlu0 %860, %v822_v22  }
  0x5e   : > { %524 = vrot.lane.b32.xlu1 %v943_v2, %s892_s17  ;;  %526 = vrot.lane.b32.xlu0 %v949_v4, %s892_s17 }
  0x62   : > { %528 = vrot.lane.b32.xlu1 %v941_v1, %s892_s17  ;;  %530 = vrot.lane.b32.xlu0 %v947_v3, %s892_s17 }
  0x66   : > { %566 = vrot.lane.b32.xlu1 %v943_v2, %s893_s18  ;;  %568 = vrot.lane.b32.xlu0 %v949_v4, %s893_s18 }
  0x6a   : > { %570 = vrot.lane.b32.xlu1 %v941_v1, %s893_s18  ;;  %572 = vrot.lane.b32.xlu0 %v947_v3, %s893_s18 }
  0x6e   : > { %650 = vperm.xlu1 %861, %v646_v23   ;;  %655 = vperm.xlu0 %860, %v647_v24  }
  0x72   : > { %604 = vrot.lane.b32.xlu1 %v943_v2, %s894_s23  ;;  %606 = vrot.lane.b32.xlu0 %v949_v4, %s894_s23 }
  0x76   : > { %608 = vrot.lane.b32.xlu1 %v941_v1, %s894_s23  ;;  %610 = vrot.lane.b32.xlu0 %v947_v3, %s894_s23 }
  0x84   : > { %v299_v25 = vpop.permute.xlu1 %298  ;;  %v295_v26 = vpop.permute.xlu0 %294 }
  0x85   : > { %v310_v36 = vsel %vm302_vm0, 0.0, %v299_v25  ;;  %v309_v37 = vsel %vm302_vm0, 0.0, %v295_v26 }
  0x86   : > { %v315_v40 = vsel %vm1050_vm1, %v310_v36, 0.0  ;;  %v313_v43 = vsel %vm1050_vm1, %v309_v37, 0.0 }
  0x88   : > { %v301_v27 = vpop.permute.xlu1 %300  ;;  %v297_v28 = vpop.permute.xlu0 %296 }
  0x89   : > { %v304_v30 = vsel %vm302_vm0, %v299_v25, %v301_v27  ;;  %v303_v31 = vsel %vm302_vm0, %v295_v26, %v297_v28 }
  0x8a   : > { %v316_v41 = vsel %vm1056_vm2, %v304_v30, 0.0  ;;  %v314_v44 = vsel %vm1056_vm2, %v303_v31, 0.0 }
  0x99   : > { %v327_v42 = vpop.permute.xlu1 %326  ;;  %v322_v45 = vpop.permute.xlu0 %321 }
  0x9a   : > { %v331_v46 = vmul.f32 %v327_v42, %v315_v40  ;;  %v332_v47 = vmul.f32 %v327_v42, %v316_v41  ;;  %v329_v48 = vmul.f32 %v322_v45, %v313_v43  ;;  %v330_v49 = vmul.f32 %v322_v45, %v314_v44 }
  0x9d   : > { %v338_v50 = vpop.permute.xlu1 %337  ;;  %v340_v51 = vpop.permute.xlu0 %339 }
  0x9e   : > { %v346_v52 = vsel %vm345_vm3, %v338_v50, %v340_v51  ;;  %v352_v56 = vsel %vm345_vm3, 0.0, %v338_v50 }
  0xa1   : > { %v342_v53 = vpop.permute.xlu1 %341  ;;  %v344_v54 = vpop.permute.xlu0 %343 }
  0xa2   : > { %v347_v55 = vsel %vm345_vm3, %v342_v53, %v344_v54  ;;  %v353_v57 = vsel %vm345_vm3, 0.0, %v342_v53 }
  0xa5   : > { %v360_v58 = vpop.permute.xlu1 %359  ;;  %v365_v59 = vpop.permute.xlu0 %364 }
  0xa6   : > { %v367_v60 = vmul.f32 %v360_v58, %v352_v56  ;;  %v368_v61 = vmul.f32 %v360_v58, %v346_v52  ;;  %v369_v62 = vmul.f32 %v365_v59, %v353_v57  ;;  %v370_v63 = vmul.f32 %v365_v59, %v347_v55 }
  0xa8   : > { %v371_v0 = vadd.f32 %v367_v60, %v329_v48  ;;  %v372_v5 = vadd.f32 %v368_v61, %v330_v49  ;;  %v1068_v6 = vadd.f32 %v369_v62, %v331_v46  ;;  %v1070_v7 = vadd.f32 %v370_v63, %v332_v47 }
  0xa9   : > { %v376_v8 = vpop.permute.xlu1 %375  ;;  %v378_v9 = vpop.permute.xlu0 %377 }
  0xaa   : > { %v390_v40 = vsel %vm383_vm4, 0.0, %v376_v8  ;;  %v384_v41 = vsel %vm383_vm4, %v376_v8, %v378_v9 }
  0xab   : > { %v394_v48 = vsel %vm1094_vm5, %v390_v40, 0.0  ;;  %v395_v32 = vsel %vm1100_vm6, %v384_v41, 0.0 }
  0xad   : > { %v380_v10 = vpop.permute.xlu1 %379  ;;  %v382_v11 = vpop.permute.xlu0 %381 }
  0xae   : > { %v391_v46 = vsel %vm383_vm4, 0.0, %v380_v10  ;;  %v385_v47 = vsel %vm383_vm4, %v380_v10, %v382_v11 }
  0xaf   : > { %v396_v33 = vsel %vm1094_vm5, %v391_v46, 0.0  ;;  %v397_v35 = vsel %vm1100_vm6, %v385_v47, 0.0 }
  0xb1   : > { %v404_v12 = vpop.permute.xlu1 %403  ;;  %v409_v13 = vpop.permute.xlu0 %408 }
  0xb2   : > { %v411_v34 = vmul.f32 %v404_v12, %v394_v48  ;;  %v412_v49 = vmul.f32 %v404_v12, %v395_v32  ;;  %v413_v54 = vmul.f32 %v409_v13, %v396_v33  ;;  %v414_v55 = vmul.f32 %v409_v13, %v397_v35 }
  0xb4   : > { %v415_v58 = vadd.f32 %v411_v34, %v371_v0  ;;  %v416_v59 = vadd.f32 %v412_v49, %v372_v5  ;;  %v417_v12 = vadd.f32 %v413_v54, %v1068_v6  ;;  %v418_v13 = vadd.f32 %v414_v55, %v1070_v7 }
  0xb5   : > { %v420_v14 = vpop.permute.xlu1 %419  ;;  %v422_v15 = vpop.permute.xlu0 %421 }
  0xb6   : > { %v434_v50 = vsel %vm427_vm7, 0.0, %v420_v14  ;;  %v428_v51 = vsel %vm427_vm7, %v420_v14, %v422_v15 }
  0xb7   : > { %v436_v60 = vsel %vm1050_vm1, %v434_v50, 0.0  ;;  %v437_v61 = vsel %vm1056_vm2, %v428_v51, 0.0 }
  0xb9   : > { %v424_v16 = vpop.permute.xlu1 %423  ;;  %v426_v17 = vpop.permute.xlu0 %425 }
  0xba   : > { %v435_v56 = vsel %vm427_vm7, 0.0, %v424_v16  ;;  %v429_v57 = vsel %vm427_vm7, %v424_v16, %v426_v17 }
  0xbb   : > { %v438_v10 = vsel %vm1050_vm1, %v435_v56, 0.0  ;;  %v439_v0 = vsel %vm1056_vm2, %v429_v57, 0.0 }
  0xbd   : > { %v446_v18 = vpop.permute.xlu1 %445  ;;  %v451_v19 = vpop.permute.xlu0 %450 }
  0xbe   : > { %v453_v8 = vmul.f32 %v446_v18, %v436_v60  ;;  %v454_v9 = vmul.f32 %v446_v18, %v437_v61  ;;  %v455_v14 = vmul.f32 %v451_v19, %v438_v10  ;;  %v456_v15 = vmul.f32 %v451_v19, %v439_v0 }
  0xc0   : > { %v457_v40 = vadd.f32 %v453_v8, %v415_v58  ;;  %v458_v41 = vadd.f32 %v454_v9, %v416_v59  ;;  %v459_v33 = vadd.f32 %v455_v14, %v417_v12  ;;  %v460_v35 = vadd.f32 %v456_v15, %v418_v13 }
  0xc1   : > { %v1072_v20 = vpop.permute.xlu1 %466  ;;  %v1074_v21 = vpop.permute.xlu0 %471 }
  0xc2   : > { %v475_v6 = vmul.f32 %v1072_v20, %v949_v4  ;;  %v476_v46 = vmul.f32 %v1074_v21, %v941_v1 }
  0xc4   : > { %v480_v61 = vadd.f32 %v476_v46, %v459_v33 }
  0xc5   : > { %v1076_v22 = vpop.permute.xlu1 %508  ;;  %v1078_v23 = vpop.permute.xlu0 %513 }
  0xc9   : > { %v1080_v24 = vpop.permute.xlu1 %550  ;;  %v1082_v25 = vpop.permute.xlu0 %555 }
  0xcd   : > { %v1084_v26 = vpop.permute.xlu1 %588  ;;  %v1086_v27 = vpop.permute.xlu0 %593 }
  0xd1   : > { %v483_v28 = vpop.permute.xlu1 %482  ;;  %v485_v29 = vpop.permute.xlu0 %484 }
  0xd2   : > { %v491_v62 = vsel %vm490_vm8, %v483_v28, %v485_v29  ;;  %v497_v63 = vsel %vm490_vm8, %v485_v29, 0.0  ;;  %v474_v29 = vmul.f32 %v1072_v20, %v943_v2 }
  0xd3   : > { %v499_v16 = vsel %vm1094_vm5, %v491_v62, 0.0  ;;  %v500_v17 = vsel %vm1100_vm6, %v497_v63, 0.0 }
  0xd4   : > { %v516_v48 = vmul.f32 %v1076_v22, %v499_v16  ;;  %v517_v32 = vmul.f32 %v1076_v22, %v500_v17  ;;  %v478_v50 = vadd.f32 %v474_v29, %v457_v40  ;;  %v479_v22 = vadd.f32 %v475_v6, %v458_v41 }
  0xd5   : > { %v487_v30 = vpop.permute.xlu1 %486  ;;  %v489_v31 = vpop.permute.xlu0 %488 }
  0xd6   : > { %v492_v18 = vsel %vm490_vm8, %v487_v30, %v489_v31  ;;  %v498_v28 = vsel %vm490_vm8, %v489_v31, 0.0  ;;  %v477_v30 = vmul.f32 %v1074_v21, %v947_v3  ;;  %v520_v63 = vadd.f32 %v516_v48, %v478_v50 }
  0xd7   : > { %v501_v20 = vsel %vm1094_vm5, %v492_v18, 0.0 }
  0xd8   : > { %v518_v51 = vmul.f32 %v1078_v23, %v501_v20  ;;  %v481_v62 = vadd.f32 %v477_v30, %v460_v35 }
  0xd9   : > { %v1088_v36 = vpop.permute.xlu1 %630  ;;  %v1090_v37 = vpop.permute.xlu0 %635 }
  0xdd   : > { %v525_v44 = vpop.permute.xlu1 %524  ;;  %v527_v45 = vpop.permute.xlu0 %526 }
  0xde   : > { %v533_v7 = vsel %vm532_vm9, %v525_v44, %v527_v45  ;;  %v539_v19 = vsel %vm532_vm9, %v527_v45, 0.0  ;;  %v502_v44 = vsel %vm1100_vm6, %v498_v28, 0.0 }
  0xdf   : > { %v541_v45 = vsel %vm1050_vm1, %v533_v7, 0.0  ;;  %v542_v34 = vsel %vm1056_vm2, %v539_v19, 0.0  ;;  %v519_v54 = vmul.f32 %v1078_v23, %v502_v44  ;;  %v521_v23 = vadd.f32 %v517_v32, %v479_v22 }
  0xe0   : > { %v558_v59 = vmul.f32 %v1080_v24, %v541_v45 }
  0xe1   : > { %v529_v52 = vpop.permute.xlu1 %528  ;;  %v531_v53 = vpop.permute.xlu0 %530 }
  0xe2   : > { %v534_v21 = vsel %vm532_vm9, %v529_v52, %v531_v53  ;;  %v540_v49 = vsel %vm532_vm9, %v531_v53, 0.0  ;;  %v559_v52 = vmul.f32 %v1080_v24, %v542_v34  ;;  %v523_v24 = vadd.f32 %v519_v54, %v481_v62 }
  0xe3   : > { %v543_v53 = vsel %vm1050_vm1, %v534_v21, 0.0  ;;  %v544_v60 = vsel %vm1056_vm2, %v540_v49, 0.0  ;;  %v562_v13 = vadd.f32 %v558_v59, %v520_v63 }
  0xe4   : > { %v560_v38 = vmul.f32 %v1082_v25, %v543_v53  ;;  %v563_v14 = vadd.f32 %v559_v52, %v521_v23 }
  0xe5   : > { %v567_v5 = vpop.permute.xlu1 %566  ;;  %v569_v11 = vpop.permute.xlu0 %568 }
  0xe6   : > { %v575_v55 = vsel %vm574_vm10, %v567_v5, %v569_v11  ;;  %v581_v56 = vsel %vm574_vm10, %v569_v11, 0.0  ;;  %v522_v5 = vadd.f32 %v518_v51, %v480_v61  ;;  %v561_v11 = vmul.f32 %v1082_v25, %v544_v60 }
  0xe7   : > { %v596_v8 = vmul.f32 %v1084_v26, %v575_v55  ;;  %v597_v9 = vmul.f32 %v1084_v26, %v581_v56 }
  0xe8   : > { %v564_v19 = vadd.f32 %v560_v38, %v522_v5  ;;  %v565_v40 = vadd.f32 %v561_v11, %v523_v24 }
  0xe9   : > { %v571_v31 = vpop.permute.xlu1 %570  ;;  %v573_v47 = vpop.permute.xlu0 %572  ;;  %v600_v29 = vadd.f32 %v596_v8, %v562_v13  ;;  %v601_v25 = vadd.f32 %v597_v9, %v563_v14 }
  0xea   : > { %v576_v10 = vsel %vm574_vm10, %v571_v31, %v573_v47  ;;  %v582_v0 = vsel %vm574_vm10, %v573_v47, 0.0 }
  0xeb   : > { %v598_v26 = vmul.f32 %v1086_v27, %v576_v10  ;;  %v599_v17 = vmul.f32 %v1086_v27, %v582_v0 }
  0xed   : > { %v651_v57 = vpop.permute.xlu1 %650  ;;  %v656_v58 = vpop.permute.xlu0 %655  ;;  %v602_v48 = vadd.f32 %v598_v26, %v564_v19  ;;  %v603_v32 = vadd.f32 %v599_v17, %v565_v40 }
  0xf1   : > { %v605_v39 = vpop.permute.xlu1 %604  ;;  %v607_v12 = vpop.permute.xlu0 %606 }
  0xf2   : > { %v613_v15 = vsel %vm612_vm11, %v605_v39, %v607_v12  ;;  %v619_v16 = vsel %vm612_vm11, %v607_v12, 0.0 }
  0xf3   : > { %v621_v18 = vsel %vm1094_vm5, %v613_v15, 0.0  ;;  %v622_v28 = vsel %vm1100_vm6, %v619_v16, 0.0 }
  0xf4   : > { %v638_v6 = vmul.f32 %v1088_v36, %v621_v18  ;;  %v639_v7 = vmul.f32 %v1088_v36, %v622_v28 }
  0xf5   : > { %v609_v41 = vpop.permute.xlu1 %608  ;;  %v611_v46 = vpop.permute.xlu0 %610 }
  0xf6   : > { %v642_v30 = vadd.f32 %v638_v6, %v600_v29  ;;  %v643_v31 = vadd.f32 %v639_v7, %v601_v25  ;;  %v614_v27 = vsel %vm612_vm11, %v609_v41, %v611_v46  ;;  %v620_v47 = vsel %vm612_vm11, %v611_v46, 0.0 }
  0xf7   : > { %v623_v20 = vsel %vm1094_vm5, %v614_v27, 0.0  ;;  %v624_v44 = vsel %vm1100_vm6, %v620_v47, 0.0 }
  0xf8   : > { %v658_v36 = vadd.f32 %v651_v57, %v642_v30  ;;  %v659_v45 = vadd.f32 %v651_v57, %v643_v31  ;;  %v640_v34 = vmul.f32 %v1090_v37, %v623_v20  ;;  %v641_v21 = vmul.f32 %v1090_v37, %v624_v44 }
  0xfa   : > { %v662_v49 = vmax.f32 %v943_v2, %v658_v36  ;;  %v663_v33 = vmax.f32 %v949_v4, %v659_v45  ;;  %v644_v42 = vadd.f32 %v640_v34, %v602_v48  ;;  %v645_v35 = vadd.f32 %v641_v21, %v603_v32 }
  0xfc   : > { %666 = vst [vmem:[%s257_s26] sm:$0xff] %v662_v49  ;;  %667 = vst [vmem:[%s257_s26 + $0x8] sm:$0xff] %v663_v33  ;;  %v660_v43 = vadd.f32 %v656_v58, %v644_v42  ;;  %v661_v50 = vadd.f32 %v656_v58, %v645_v35 }
  0xfe   : > { %v664_v22 = vmax.f32 %v941_v1, %v660_v43  ;;  %v665_v51 = vmax.f32 %v947_v3, %v661_v50 }
 0x100   : > { %668 = vst [vmem:[%s257_s26 + $0x10] sm:$0xff] %v664_v22  ;;  %669 = vst [vmem:[%s257_s26 + $0x18] sm:$0xff] %v665_v51 }
 0x101 PF: > { %s13_s14 = sadd.s32 1, %s884_s14   ;;  %s1220_s12 = smov %s880_s13 }
 0x102   : > { %p10_p5 = scmp.ge.s32.totalorder %s13_s14, 4   ;;  %s1221_s13 = smov %s1223_s15 }
 0x104   :  { %12 = sbr.rel (!%p10_p5) target bundleno = 2 (0x2), region = 76 }

</bundles_post_ra>
